<compile_context>
chip_gen: v7x
topology: tpu7x:2x2x1
jax: 0.10.0
libtpu: 0.0.40
codegen_flags: <defaults>
</compile_context>

<pallas_src>
import functools

import jax
import jax.numpy as jnp
import numpy as np
from jax.experimental import pallas as pl
from jax.experimental.pallas import tpu as pltpu


def _round_up(x, m):
    return (x + m - 1) // m * m


def _embedding_kernel(pos_ref, ids_ref, tokpos_ref, emb_ref, pe_ref, out_ref, *, scale):
    # pos_ref    : (1,) int32 in SMEM (scalar prefetch)          -- dynamic `pos`
    # ids_ref    : (TILE, 1) int32  -- token ids of this tile
    # tokpos_ref : (TILE, 1) int32  -- sequence index (t // batch) of each token
    # emb_ref    : (vocab_p, dim) f32 -- resident embedding table (row padding = 0)
    # pe_ref     : (max_len, dim) f32 -- resident positional-encoding table
    # out_ref    : (TILE, dim) f32
    tile = out_ref.shape[0]
    vocab_p = emb_ref.shape[0]
    max_len = pe_ref.shape[0]

    # --- embedding-row gather as a one-hot matmul on the MXU -----------------
    ids = ids_ref[...]                                            # (tile, 1)
    vocab_iota = jax.lax.broadcasted_iota(jnp.int32, (tile, vocab_p), 1)
    onehot_tok = (ids == vocab_iota).astype(jnp.float32)          # (tile, vocab_p)
    emb_rows = jnp.dot(onehot_tok, emb_ref[...],
                       preferred_element_type=jnp.float32)        # (tile, dim)

    # --- positional-encoding rows (position = pos + t // batch) --------------
    position = tokpos_ref[...] + pos_ref[0]                       # (tile, 1)
    pos_iota = jax.lax.broadcasted_iota(jnp.int32, (tile, max_len), 1)
    onehot_pos = (position == pos_iota).astype(jnp.float32)       # (tile, max_len)
    pe_rows = jnp.dot(onehot_pos, pe_ref[...],
                      preferred_element_type=jnp.float32)         # (tile, dim)

    out_ref[...] = emb_rows * scale + pe_rows


def embedding_forward(ids, emb_weight, pe, pos=0, *, token_tile=128):
    """ids: (seq, batch) int32; emb_weight: (vocab, dim) f32; pe: (max_len, dim) f32."""
    seq, batch = ids.shape
    vocab, dim = emb_weight.shape
    max_len = pe.shape[0]
    scale = float(dim) ** 0.5

    if isinstance(pos, int):
        assert pos + seq <= max_len, "pos + seq exceeds positional-encoding table"

    # Pad vocab rows to a multiple of 128 (zero rows; valid ids never hit them).
    vocab_p = _round_up(vocab, 128)
    if vocab_p != vocab:
        emb_weight = jnp.pad(emb_weight, ((0, vocab_p - vocab), (0, 0)))

    # Flatten (seq, batch) time-major -> token axis, pad to a tile multiple.
    n_tok = seq * batch
    n_tiles = pl.cdiv(n_tok, token_tile)
    n_pad = n_tiles * token_tile
    ids_col = jnp.pad(ids.reshape(-1).astype(jnp.int32),
                      (0, n_pad - n_tok)).reshape(n_pad, 1)
    tokpos_col = (jnp.arange(n_pad, dtype=jnp.int32) // batch).reshape(n_pad, 1)
    pos_arr = jnp.asarray(pos, dtype=jnp.int32).reshape(1)

    grid_spec = pltpu.PrefetchScalarGridSpec(
        num_scalar_prefetch=1,          # `pos` lands in SMEM
        grid=(n_tiles,),
        in_specs=[
            pl.BlockSpec((token_tile, 1), lambda i, pos_ref: (i, 0)),   # ids
            pl.BlockSpec((token_tile, 1), lambda i, pos_ref: (i, 0)),   # tok seq idx
            pl.BlockSpec((vocab_p, dim), lambda i, pos_ref: (0, 0)),    # emb (resident)
            pl.BlockSpec((max_len, dim), lambda i, pos_ref: (0, 0)),    # pe  (resident)
        ],
        out_specs=pl.BlockSpec((token_tile, dim), lambda i, pos_ref: (i, 0)),
    )

    out_flat = pl.pallas_call(
        functools.partial(_embedding_kernel, scale=scale),
        grid_spec=grid_spec,
        out_shape=jax.ShapeDtypeStruct((n_pad, dim), jnp.float32),
        compiler_params=pltpu.CompilerParams(
            # Single token-tile axis; "parallel" lets v7x shard tiles across
            # its 2 TensorCores.
            dimension_semantics=("parallel",)),
    )(pos_arr, ids_col, tokpos_col, emb_weight, pe)

    return out_flat[:n_tok].reshape(seq, batch, dim)


def make_params(vocab_size, dim, padding_idx=0, max_len=1024, key=None):
    """Deterministic parameter init mirroring nn.Embedding + sinusoidal pe buffer."""
    key = jax.random.PRNGKey(0) if key is None else key
    w = jax.random.normal(key, (vocab_size, dim), dtype=jnp.float32)
    w = w.at[padding_idx].set(0.0)  # padding_idx row is zero, as in nn.Embedding

    position = jnp.arange(max_len, dtype=jnp.float32)[:, None]
    div_term = jnp.exp(
        jnp.arange(0, dim, 2, dtype=jnp.float32) * (-jnp.log(jnp.float32(10000.0)) / dim)
    )
    pe = jnp.zeros((max_len, dim), jnp.float32)
    pe = pe.at[:, 0::2].set(jnp.sin(position * div_term))
    pe = pe.at[:, 1::2].set(jnp.cos(position * div_term))
    return w, pe


if __name__ == "__main__":
    vocab_size, dim, seq, batch = 100, 128, 8, 2
    key = jax.random.PRNGKey(0)
    k_w, k_ids = jax.random.split(key)

    emb_weight, pe = make_params(vocab_size, dim, padding_idx=0, key=k_w)
    ids = jax.random.randint(k_ids, (seq, batch), 0, vocab_size, dtype=jnp.int32)
    ids = ids.at[0, 0].set(0)  # exercise the padding_idx (zero) row

    sqrt_d = float(dim) ** 0.5

    # pos = 0
    out0 = jax.block_until_ready(embedding_forward(ids, emb_weight, pe, pos=0))
    ref0 = emb_weight[ids] * sqrt_d + pe[0:seq][:, None, :]
    np.testing.assert_allclose(np.asarray(out0), np.asarray(ref0), rtol=1e-6, atol=1e-6)

    # non-zero (dynamic) pos
    out5 = jax.block_until_ready(embedding_forward(ids, emb_weight, pe, pos=5))
    ref5 = emb_weight[ids] * sqrt_d + pe[5:5 + seq][:, None, :]
    np.testing.assert_allclose(np.asarray(out5), np.asarray(ref5), rtol=1e-6, atol=1e-6)

    print("KERNEL_OK")
</pallas_src>

<mosaic_0001>
module attributes {stable_mosaic.version = 11 : i64} {
  func.func @_embedding_kernel(%arg0: i32, %arg1: memref<1xi32, #tpu.memory_space<smem>>, %arg2: memref<128x1xi32, #tpu.memory_space<vmem>>, %arg3: memref<128x1xi32, #tpu.memory_space<vmem>>, %arg4: memref<128x128xf32, #tpu.memory_space<vmem>>, %arg5: memref<1024x128xf32, #tpu.memory_space<vmem>>, %arg6: memref<128x128xf32, #tpu.memory_space<vmem>>) attributes {dimension_semantics = [#tpu.dimension_semantics<parallel>], iteration_bounds = array<i64: 1>, scalar_prefetch = 1 : i64, scratch_operands = 0 : i64, tpu.core_type = #tpu.core_type<tc>, window_params = [{transform_indices = @transform_0, window_bounds = array<i64: 128, 1>}, {transform_indices = @transform_1, window_bounds = array<i64: 128, 1>}, {pipeline_mode = #tpu.pipeline_mode<synchronous>, transform_indices = @transform_2, window_bounds = array<i64: 128, 128>}, {pipeline_mode = #tpu.pipeline_mode<synchronous>, transform_indices = @transform_3, window_bounds = array<i64: 1024, 128>}, {transform_indices = @transform_4, window_bounds = array<i64: 128, 128>}]} {
    %c0 = arith.constant 0 : index
    %c0_0 = arith.constant 0 : index
    %0 = vector.load %arg2[%c0, %c0_0] : memref<128x1xi32, #tpu.memory_space<vmem>>, vector<128x1xi32>
    %1 = tpu.iota {dimensions = array<i32: 1>} : vector<128x128xi32>
    %2 = vector.broadcast %0 : vector<128x1xi32> to vector<128x128xi32>
    %3 = arith.cmpi eq, %2, %1 : vector<128x128xi32>
    %4 = arith.extui %3 : vector<128x128xi1> to vector<128x128xi32>
    %5 = arith.sitofp %4 : vector<128x128xi32> to vector<128x128xf32>
    %c0_1 = arith.constant 0 : index
    %c0_2 = arith.constant 0 : index
    %6 = vector.load %arg4[%c0_1, %c0_2] : memref<128x128xf32, #tpu.memory_space<vmem>>, vector<128x128xf32>
    %cst = arith.constant dense<0.000000e+00> : vector<128x128xf32>
    %7 = tpu.matmul %5, %6, %cst {dimension_numbers = #tpu.dot_dimension_numbers<[1], [0], [0], [1], [0, 0, 1, 1], [], []>} : vector<128x128xf32>, vector<128x128xf32>, vector<128x128xf32> -> vector<128x128xf32>
    %c0_3 = arith.constant 0 : index
    %c0_4 = arith.constant 0 : index
    %8 = vector.load %arg3[%c0_3, %c0_4] : memref<128x1xi32, #tpu.memory_space<vmem>>, vector<128x1xi32>
    %c0_5 = arith.constant 0 : index
    %9 = memref.load %arg1[%c0_5] : memref<1xi32, #tpu.memory_space<smem>>
    %10 = vector.broadcast %9 : i32 to vector<128x1xi32>
    %11 = arith.addi %8, %10 : vector<128x1xi32>
    %12 = tpu.iota {dimensions = array<i32: 1>} : vector<128x1024xi32>
    %13 = vector.broadcast %11 : vector<128x1xi32> to vector<128x1024xi32>
    %14 = arith.cmpi eq, %13, %12 : vector<128x1024xi32>
    %15 = arith.extui %14 : vector<128x1024xi1> to vector<128x1024xi32>
    %16 = arith.sitofp %15 : vector<128x1024xi32> to vector<128x1024xf32>
    %c0_6 = arith.constant 0 : index
    %c0_7 = arith.constant 0 : index
    %17 = vector.load %arg5[%c0_6, %c0_7] : memref<1024x128xf32, #tpu.memory_space<vmem>>, vector<1024x128xf32>
    %cst_8 = arith.constant dense<0.000000e+00> : vector<128x128xf32>
    %18 = tpu.matmul %16, %17, %cst_8 {dimension_numbers = #tpu.dot_dimension_numbers<[1], [0], [0], [1], [0, 0, 1, 1], [], []>} : vector<128x1024xf32>, vector<1024x128xf32>, vector<128x128xf32> -> vector<128x128xf32>
    %cst_9 = arith.constant 11.3137083 : f32
    %19 = vector.broadcast %cst_9 : f32 to vector<128x128xf32>
    %20 = arith.mulf %7, %19 : vector<128x128xf32>
    %21 = arith.addf %20, %18 : vector<128x128xf32>
    %c0_10 = arith.constant 0 : index
    %c0_11 = arith.constant 0 : index
    %22 = vector.load %arg6[%c0_10, %c0_11] : memref<128x128xf32, #tpu.memory_space<vmem>>, vector<128x128xf32>
    tpu.vector_store %arg6[%c0_10, %c0_11], %21 {strides = array<i32>} : memref<128x128xf32, #tpu.memory_space<vmem>>, vector<128x128xf32>,
    return
  }
  func.func @transform_0(%arg0: i32, %arg1: memref<1xi32, #tpu.memory_space<smem>>) -> (i32, i32) {
    %c0_i32 = arith.constant 0 : i32
    %c0_i32_0 = arith.constant 0 : i32
    return %arg0, %c0_i32 : i32, i32
  }
  func.func @transform_1(%arg0: i32, %arg1: memref<1xi32, #tpu.memory_space<smem>>) -> (i32, i32) {
    %c0_i32 = arith.constant 0 : i32
    %c0_i32_0 = arith.constant 0 : i32
    return %arg0, %c0_i32 : i32, i32
  }
  func.func @transform_2(%arg0: i32, %arg1: memref<1xi32, #tpu.memory_space<smem>>) -> (i32, i32) {
    %c0_i32 = arith.constant 0 : i32
    %c0_i32_0 = arith.constant 0 : i32
    %c0_i32_1 = arith.constant 0 : i32
    return %c0_i32, %c0_i32_0 : i32, i32
  }
  func.func @transform_3(%arg0: i32, %arg1: memref<1xi32, #tpu.memory_space<smem>>) -> (i32, i32) {
    %c0_i32 = arith.constant 0 : i32
    %c0_i32_0 = arith.constant 0 : i32
    %c0_i32_1 = arith.constant 0 : i32
    return %c0_i32, %c0_i32_0 : i32, i32
  }
  func.func @transform_4(%arg0: i32, %arg1: memref<1xi32, #tpu.memory_space<smem>>) -> (i32, i32) {
    %c0_i32 = arith.constant 0 : i32
    %c0_i32_0 = arith.constant 0 : i32
    return %arg0, %c0_i32 : i32, i32
  }
}

</mosaic_0001>

<bundles_post_ra>
// kernel: tpu_custom_call.1
= control target key start
LH: loop header
LB: loop body
LE: loop exit
PB: predicated region body
PF: predicated region fallthrough
CT: control target
= control target key end

     0   :  { %11 = vsyncpa [#allocation5], 0  ;;  %s3368_s0 = inlined_call_operand.<no memory space> [shape: s32[1], index: 0, kind: input, shape index: {}]   ;;  %s3369_s1 = inlined_call_operand.vmem [shape: s32[128,1], index: 1, kind: input, shape index: {}]   ;;  %s3370_s2 = inlined_call_operand.vmem [shape: s32[128,1], index: 2, kind: input, shape index: {}]   ;;  %s3371_s3 = inlined_call_operand.vmem [shape: f32[128,128], index: 3, kind: input, shape index: {}]   ;;  %s3372_s4 = inlined_call_operand.hbm [shape: f32[1024,128], index: 4, kind: input, shape index: {}]   ;;  %s3373_s5 = inlined_call_operand.hbm [shape: f32[128,128], index: 5, kind: output, shape index: {}]  }
   0x1   :  { %12 = vsyncpa [#allocation6], 0  ;;  %s2483_s18 = smov [#allocation4]   ;;  %s2435_s22 = scalar_lea.hbm %s3372_s4, 16384 }
   0x2   :  { %s24_s19 = sshll.u32 %s2483_s18, 4  ;;  %p2436_p0 = scmp.ne.s32.totalorder %s3372_s4, %s2435_s22  ;;  %s25_s19 = int_to_ptr.vmem [resolvable:$true] %s24_s19 }
   0x3   :  { %p2439_p1 = scmp.lt.u32.totalorder %s2435_s22, %s3372_s4 }
   0x5   :  { %p2441_p2 = pnand %p2439_p1, %p2436_p0 }
   0x7   :  { %2444 = shalt.err (!%p2441_p2)
}
   0x8   :  { %s2445_s27 = scalar_lea.vmem %s25_s19, 16384  ;;  %p2450_p4 = scmp.lt.s32.totalorder %s25_s19, %s25_s19 }
   0x9   :  { %p2446_p3 = scmp.ne.s32.totalorder %s25_s19, %s2445_s27  ;;  %p2451_p5 = scmp.lt.s32.totalorder %s2445_s27, %s2445_s27 }
   0xb   :  { %p2452_p6 = por %p2451_p5, %p2450_p4 }
   0xd   :  { %p2453_p7 = pnand %p2452_p6, %p2446_p3 }
   0xf   :  { %2456 = shalt.err (!%p2453_p7)
}
  0x10   :  { %s2484_s28 = smov 128   ;;  %s2485_s29 = smov 8  }
  0x11   :  { %30 = dma.hbm_to_vmem [thread:$0]  %s3372_s4, 16384, %s25_s19, [#allocation5], %s2484_s28, %s2484_s28, %s2485_s29  }
  0x12   :  { %2479 = dma.done.wait [#allocation5], 16384  }
  0x13   :  { %2480 = vsyncadd [#allocation5], 4294950912  ;;  %v2486_v0 = vmov 0   ;;  %v2537_v1 = vstv %s3368_s0  ;;  %v35_v2 = vld [vmem:[%s3369_s1 + $0x8] sm:$0xff]  ;;  %v34_v3 = vld [vmem:[%s3369_s1] sm:$0xff] }
  0x14   :  { %2434 = vset.pattern.permute.xlu1 %v2486_v0  ;;  %2433 = vset.pattern.permute.xlu0 %v2486_v0  ;;  %v309_v4 = vld [vmem:[%s3370_s2] sm:$0xff]  ;;  %v36_v5 = vld [vmem:[%s3369_s1 + $0x10] sm:$0xff]  ;;  %v310_v7 = vld [vmem:[%s3370_s2 + $0x8] sm:$0xff] }
  0x15   :  { %56 = vperm.xlu1 %2434, %v35_v2   ;;  %53 = vperm.xlu0 %2433, %v34_v3   ;;  %v327_v6 = vadd.s32 %v2537_v1, %v309_v4  ;;  %v328_v8 = vadd.s32 %v2537_v1, %v310_v7  ;;  %v37_v9 = vld [vmem:[%s3369_s1 + $0x18] sm:$0xff]  ;;  %v311_v10 = vld [vmem:[%s3370_s2 + $0x10] sm:$0xff]  ;;  %v38_v12 = vld [vmem:[%s3369_s1 + $0x20] sm:$0xff] }
  0x16   :  { %v329_v11 = vadd.s32 %v2537_v1, %v311_v10  ;;  %v148_v13 = vld [vmem:[%s3371_s3] sm:$0xff]  ;;  %v149_v14 = vld [vmem:[%s3371_s3 + $0x8] sm:$0xff]  ;;  %v150_v15 = vld [vmem:[%s3371_s3 + $0x10] sm:$0xff] }
  0x17   :  { %v151_v16 = vld [vmem:[%s3371_s3 + $0x18] sm:$0xff]  ;;  %v40_v17 = vld [vmem:[%s3369_s1 + $0x30] sm:$0xff]  ;;  %v39_v18 = vld [vmem:[%s3369_s1 + $0x28] sm:$0xff]  ;;  %v2251_v20 = vpack.c.bf16 %v149_v14, %v148_v13 }
  0x18   :  { %v312_v19 = vld [vmem:[%s3370_s2 + $0x18] sm:$0xff]  ;;  %v2255_v21 = vpack.c.bf16 %v151_v16, %v150_v15  ;;  %v798_v22 = vld [vmem:[#allocation4 + $0x80] sm:$0xff]  ;;  %v799_v23 = vld [vmem:[#allocation4 + $0x88] sm:$0xff] }
  0x19   :  { %59 = vperm.xlu1 %2434, %v36_v5   ;;  %351 = vperm.xlu0 %2433, %v327_v6   ;;  %v782_v24 = vld [vmem:[#allocation4] sm:$0xff]  ;;  %v2283_v25 = vpack.c.bf16 %v799_v23, %v798_v22  ;;  %v783_v26 = vld [vmem:[#allocation4 + $0x8] sm:$0xff]  ;;  %v800_v30 = vld [vmem:[#allocation4 + $0x90] sm:$0xff]  ;;  %v330_v40 = vadd.s32 %v2537_v1, %v312_v19 }
  0x1a   :  { %v152_v27 = vld [vmem:[%s3371_s3 + $0x20] sm:$0xff]  ;;  %v153_v28 = vld [vmem:[%s3371_s3 + $0x28] sm:$0xff]  ;;  %2252 = vmatprep.subr.bf16.mxu0 %v2251_v20  ;;  %v2285_v29 = vpack.c.bf16 %v783_v26, %v782_v24  ;;  %v801_v31 = vld [vmem:[#allocation4 + $0x98] sm:$0xff] }
  0x1b   :  { %v784_v32 = vld [vmem:[#allocation4 + $0x10] sm:$0xff]  ;;  %2254 = vmatpush3.bf16.msra.mxu0 %v2251_v20  ;;  %2284 = vmatprep.subr.bf16.mxu1 %v2283_v25  ;;  %v2287_v33 = vpack.c.bf16 %v801_v31, %v800_v30  ;;  %v785_v34 = vld [vmem:[#allocation4 + $0x18] sm:$0xff]  ;;  %v2259_v35 = vpack.c.bf16 %v153_v28, %v152_v27  ;;  %v802_v38 = vld [vmem:[#allocation4 + $0xa0] sm:$0xff] }
  0x1c   :  { %2256 = vmatprep.subr.bf16.mxu0 %v2255_v21  ;;  %2286 = vmatpush3.bf16.msra.mxu1 %v2285_v29  ;;  %v2289_v36 = vpack.c.bf16 %v785_v34, %v784_v32  ;;  %v154_v37 = vld [vmem:[%s3371_s3 + $0x30] sm:$0xff]  ;;  %v803_v39 = vld [vmem:[#allocation4 + $0xa8] sm:$0xff]  ;;  %v155_v41 = vld [vmem:[%s3371_s3 + $0x38] sm:$0xff] }
  0x1d   :  { %62 = vperm.xlu1 %2434, %v37_v9   ;;  %354 = vperm.xlu0 %2433, %v328_v8   ;;  %v786_v42 = vld [vmem:[#allocation4 + $0x20] sm:$0xff]  ;;  %v787_v43 = vld [vmem:[#allocation4 + $0x28] sm:$0xff]  ;;  %v41_v44 = vld [vmem:[%s3369_s1 + $0x38] sm:$0xff]  ;;  %v2291_v46 = vpack.c.bf16 %v803_v39, %v802_v38  ;;  %v2263_v49 = vpack.c.bf16 %v155_v41, %v154_v37 }
  0x1e   :  { %v313_v45 = vld [vmem:[%s3370_s2 + $0x20] sm:$0xff]  ;;  %2288 = vmatprep.subr.bf16.mxu1 %v2287_v33  ;;  %v804_v47 = vld [vmem:[#allocation4 + $0xb0] sm:$0xff]  ;;  %v805_v48 = vld [vmem:[#allocation4 + $0xb8] sm:$0xff]  ;;  %v2293_v50 = vpack.c.bf16 %v787_v43, %v786_v42 }
  0x1f   :  { %2258 = vmatpush3.bf16.msra.mxu0 %v2255_v21  ;;  %v156_v51 = vld [vmem:[%s3371_s3 + $0x40] sm:$0xff]  ;;  %v331_v52 = vadd.s32 %v2537_v1, %v313_v45  ;;  %v157_v53 = vld [vmem:[%s3371_s3 + $0x48] sm:$0xff]  ;;  %v788_v54 = vld [vmem:[#allocation4 + $0x30] sm:$0xff]  ;;  %v2295_v57 = vpack.c.bf16 %v805_v48, %v804_v47 }
  0x20   :  { %2260 = vmatprep.subr.bf16.mxu0 %v2259_v35  ;;  %2290 = vmatpush3.bf16.msra.mxu1 %v2289_v36  ;;  %v789_v55 = vld [vmem:[#allocation4 + $0x38] sm:$0xff]  ;;  %v42_v56 = vld [vmem:[%s3369_s1 + $0x40] sm:$0xff]  ;;  %v807_v59 = vld [vmem:[#allocation4 + $0xc8] sm:$0xff]  ;;  %v2267_v60 = vpack.c.bf16 %v157_v53, %v156_v51 }
  0x21   :  { %357 = vperm.xlu1 %2434, %v329_v11   ;;  %65 = vperm.xlu0 %2433, %v38_v12   ;;  %v806_v58 = vld [vmem:[#allocation4 + $0xc0] sm:$0xff]  ;;  %v2297_v61 = vpack.c.bf16 %v789_v55, %v788_v54  ;;  %v158_v62 = vld [vmem:[%s3371_s3 + $0x50] sm:$0xff]  ;;  %v159_v63 = vld [vmem:[%s3371_s3 + $0x58] sm:$0xff] }
  0x22   :  { %2292 = vmatprep.subr.bf16.mxu1 %v2291_v46  ;;  %v790_v0 = vld [vmem:[#allocation4 + $0x40] sm:$0xff]  ;;  %v791_v2 = vld [vmem:[#allocation4 + $0x48] sm:$0xff]  ;;  %v44_v3 = vld [vmem:[%s3369_s1 + $0x50] sm:$0xff]  ;;  %v2299_v6 = vpack.c.bf16 %v807_v59, %v806_v58  ;;  %v2271_v9 = vpack.c.bf16 %v159_v63, %v158_v62 }
  0x23   :  { %2262 = vmatpush3.bf16.msra.mxu0 %v2259_v35  ;;  %v43_v4 = vld [vmem:[%s3369_s1 + $0x48] sm:$0xff]  ;;  %v808_v7 = vld [vmem:[#allocation4 + $0xd0] sm:$0xff]  ;;  %v809_v8 = vld [vmem:[#allocation4 + $0xd8] sm:$0xff]  ;;  %v2301_v10 = vpack.c.bf16 %v791_v2, %v790_v0  ;;  %v50_v2 = vlaneseq }
  0x24   :  { %2264 = vmatprep.subr.bf16.mxu0 %v2263_v49  ;;  %2294 = vmatpush3.bf16.msra.mxu1 %v2293_v50  ;;  %v314_v5 = vld [vmem:[%s3370_s2 + $0x28] sm:$0xff]  ;;  %v160_v11 = vld [vmem:[%s3371_s3 + $0x60] sm:$0xff]  ;;  %v792_v14 = vld [vmem:[#allocation4 + $0x50] sm:$0xff] }
  0x25   :  { %71 = vperm.xlu1 %2434, %v40_v17   ;;  %68 = vperm.xlu0 %2433, %v39_v18   ;;  %v332_v12 = vadd.s32 %v2537_v1, %v314_v5  ;;  %v161_v13 = vld [vmem:[%s3371_s3 + $0x68] sm:$0xff]  ;;  %v793_v15 = vld [vmem:[#allocation4 + $0x58] sm:$0xff]  ;;  %v315_v17 = vld [vmem:[%s3370_s2 + $0x30] sm:$0xff]  ;;  %v2303_v18 = vpack.c.bf16 %v809_v8, %v808_v7 }
  0x26   :  { %2296 = vmatprep.subr.bf16.mxu1 %v2295_v57  ;;  %v45_v16 = vld [vmem:[%s3369_s1 + $0x58] sm:$0xff]  ;;  %v810_v19 = vld [vmem:[#allocation4 + $0xe0] sm:$0xff]  ;;  %v811_v20 = vld [vmem:[#allocation4 + $0xe8] sm:$0xff]  ;;  %v2275_v21 = vpack.c.bf16 %v161_v13, %v160_v11  ;;  %v2305_v22 = vpack.c.bf16 %v793_v15, %v792_v14  ;;  %v333_v24 = vadd.s32 %v2537_v1, %v315_v17 }
  0x27   :  { %2266 = vmatpush3.bf16.msra.mxu0 %v2263_v49  ;;  %v162_v23 = vld [vmem:[%s3371_s3 + $0x70] sm:$0xff]  ;;  %v163_v25 = vld [vmem:[%s3371_s3 + $0x78] sm:$0xff]  ;;  %v794_v26 = vld [vmem:[#allocation4 + $0x60] sm:$0xff]  ;;  %v2307_v29 = vpack.c.bf16 %v811_v20, %v810_v19 }
  0x28   :  { %2268 = vmatprep.subr.bf16.mxu0 %v2267_v60  ;;  %2298 = vmatpush3.bf16.msra.mxu1 %v2297_v61  ;;  %v795_v27 = vld [vmem:[#allocation4 + $0x68] sm:$0xff]  ;;  %v46_v28 = vld [vmem:[%s3369_s1 + $0x60] sm:$0xff]  ;;  %v812_v30 = vld [vmem:[#allocation4 + $0xf0] sm:$0xff]  ;;  %v2279_v32 = vpack.c.bf16 %v163_v25, %v162_v23 }
  0x29   :  { %74 = vperm.xlu1 %2434, %v41_v44   ;;  %360 = vperm.xlu0 %2433, %v330_v40   ;;  %v813_v31 = vld [vmem:[#allocation4 + $0xf8] sm:$0xff]  ;;  %v2309_v33 = vpack.c.bf16 %v795_v27, %v794_v26  ;;  %v796_v34 = vld [vmem:[#allocation4 + $0x70] sm:$0xff]  ;;  %v830_v36 = vld [vmem:[#allocation4 + $0x180] sm:$0xff] }
  0x2a   :  { %2300 = vmatprep.subr.bf16.mxu1 %v2299_v6  ;;  %v797_v35 = vld [vmem:[#allocation4 + $0x78] sm:$0xff]  ;;  %v831_v37 = vld [vmem:[#allocation4 + $0x188] sm:$0xff]  ;;  %v48_v38 = vld [vmem:[%s3369_s1 + $0x70] sm:$0xff]  ;;  %v2311_v41 = vpack.c.bf16 %v813_v31, %v812_v30 }
  0x2b   :  { %2270 = vmatpush3.bf16.msra.mxu0 %v2267_v60  ;;  %v47_v39 = vld [vmem:[%s3369_s1 + $0x68] sm:$0xff]  ;;  %v316_v40 = vld [vmem:[%s3370_s2 + $0x38] sm:$0xff]  ;;  %v862_v42 = vld [vmem:[#allocation4 + $0x280] sm:$0xff]  ;;  %v2313_v44 = vpack.c.bf16 %v797_v35, %v796_v34  ;;  %v2315_v45 = vpack.c.bf16 %v831_v37, %v830_v36 }
  0x2c   :  { %2272 = vmatprep.subr.bf16.mxu0 %v2271_v9  ;;  %2302 = vmatpush3.bf16.msra.mxu1 %v2301_v10  ;;  %v863_v43 = vld [vmem:[#allocation4 + $0x288] sm:$0xff]  ;;  %v334_v46 = vadd.s32 %v2537_v1, %v316_v40  ;;  %v49_v47 = vld [vmem:[%s3369_s1 + $0x78] sm:$0xff]  ;;  %v317_v49 = vld [vmem:[%s3370_s2 + $0x40] sm:$0xff] }
  0x2d   :  { %363 = vperm.xlu1 %2434, %v331_v52   ;;  %77 = vperm.xlu0 %2433, %v42_v56   ;;  %v318_v48 = vld [vmem:[%s3370_s2 + $0x48] sm:$0xff]  ;;  %v2347_v50 = vpack.c.bf16 %v863_v43, %v862_v42  ;;  %v335_v52 = vadd.s32 %v2537_v1, %v317_v49  ;;  %v320_v53 = vld [vmem:[%s3370_s2 + $0x58] sm:$0xff]  ;;  %v319_v54 = vld [vmem:[%s3370_s2 + $0x50] sm:$0xff] }
  0x2e   :  { %2304 = vmatprep.subr.bf16.mxu1 %v2303_v18  ;;  %v336_v51 = vadd.s32 %v2537_v1, %v318_v48  ;;  %v338_v55 = vadd.s32 %v2537_v1, %v320_v53  ;;  %v337_v56 = vadd.s32 %v2537_v1, %v319_v54  ;;  %v322_v57 = vld [vmem:[%s3370_s2 + $0x68] sm:$0xff]  ;;  %v321_v58 = vld [vmem:[%s3370_s2 + $0x60] sm:$0xff]  ;;  %v324_v61 = vld [vmem:[%s3370_s2 + $0x78] sm:$0xff]  ;;  %v2487_v18 = vmov 1.0  }
  0x2f   :  { %2274 = vmatpush3.bf16.msra.mxu0 %v2271_v9  ;;  %v340_v59 = vadd.s32 %v2537_v1, %v322_v57  ;;  %v339_v60 = vadd.s32 %v2537_v1, %v321_v58  ;;  %v323_v62 = vld [vmem:[%s3370_s2 + $0x70] sm:$0xff]  ;;  %v342_v63 = vadd.s32 %v2537_v1, %v324_v61  ;;  %v815_v5 = vld [vmem:[#allocation4 + $0x108] sm:$0xff]  ;;  %v833_v7 = vld [vmem:[#allocation4 + $0x198] sm:$0xff]  ;;  %s2488_s2 = smov [#allocation7]  }
  0x30   :  { %2276 = vmatprep.subr.bf16.mxu0 %v2275_v21  ;;  %2306 = vmatpush3.bf16.msra.mxu1 %v2305_v22  ;;  %v341_v0 = vadd.s32 %v2537_v1, %v323_v62  ;;  %v832_v6 = vld [vmem:[#allocation4 + $0x190] sm:$0xff]  ;;  %v846_v11 = vld [vmem:[#allocation4 + $0x200] sm:$0xff]  ;;  %v817_v15 = vld [vmem:[#allocation4 + $0x118] sm:$0xff]  ;;  %s1543_s26 = sshll.u32 %s2488_s2, 4  ;;  %s1544_s26 = int_to_ptr.vmem [resolvable:$true] %s1543_s26 }
  0x31   :  { %83 = vperm.xlu1 %2434, %v44_v3   ;;  %80 = vperm.xlu0 %2433, %v43_v4   ;;  %v2699_v3 = vand.u32 127, %v50_v2  ;;  %v814_v4 = vld [vmem:[#allocation4 + $0x100] sm:$0xff]  ;;  %v816_v13 = vld [vmem:[#allocation4 + $0x110] sm:$0xff]  ;;  %v2319_v14 = vpack.c.bf16 %v833_v7, %v832_v6  ;;  %v835_v17 = vld [vmem:[#allocation4 + $0x1a8] sm:$0xff]  ;;  %s2457_s27 = scalar_lea.vmem %s1544_s26, 2048  ;;  %p2462_p9 = scmp.lt.s32.totalorder %s1544_s26, %s1544_s26 }
  0x32   :  { %2308 = vmatprep.subr.bf16.mxu1 %v2307_v29  ;;  %v2317_v10 = vpack.c.bf16 %v815_v5, %v814_v4  ;;  %v864_v19 = vld [vmem:[#allocation4 + $0x290] sm:$0xff]  ;;  %v865_v20 = vld [vmem:[#allocation4 + $0x298] sm:$0xff]  ;;  %v819_v22 = vld [vmem:[#allocation4 + $0x128] sm:$0xff]  ;;  %v2321_v26 = vpack.c.bf16 %v817_v15, %v816_v13  ;;  %p2458_p8 = scmp.ne.s32.totalorder %s1544_s26, %s2457_s27  ;;  %p2463_p10 = scmp.lt.s32.totalorder %s2457_s27, %s2457_s27 }
  0x33   :  { %2278 = vmatpush3.bf16.msra.mxu0 %v2275_v21  ;;  %v2704_v1 = vadd.s32 128, %v2699_v3  ;;  %v818_v21 = vld [vmem:[#allocation4 + $0x120] sm:$0xff]  ;;  %v849_v29 = vld [vmem:[#allocation4 + $0x218] sm:$0xff]  ;;  %v836_v30 = vld [vmem:[#allocation4 + $0x1b0] sm:$0xff]  ;;  %v2351_v31 = vpack.c.bf16 %v865_v20, %v864_v19 }
  0x34   :  { %2280 = vmatprep.subr.bf16.mxu0 %v2279_v32  ;;  %2310 = vmatpush3.bf16.msra.mxu1 %v2309_v33  ;;  %v866_v33 = vld [vmem:[#allocation4 + $0x2a0] sm:$0xff]  ;;  %v867_v34 = vld [vmem:[#allocation4 + $0x2a8] sm:$0xff]  ;;  %v2325_v35 = vpack.c.bf16 %v819_v22, %v818_v21  ;;  %v820_v36 = vld [vmem:[#allocation4 + $0x130] sm:$0xff]  ;;  %p2464_p11 = por %p2463_p10, %p2462_p9 }
  0x35   :  { %86 = vperm.xlu1 %2434, %v45_v16   ;;  %366 = vperm.xlu0 %2433, %v332_v12   ;;  %v847_v12 = vld [vmem:[#allocation4 + $0x208] sm:$0xff]  ;;  %v834_v16 = vld [vmem:[#allocation4 + $0x1a0] sm:$0xff]  ;;  %v821_v37 = vld [vmem:[#allocation4 + $0x138] sm:$0xff] }
  0x36   :  { %2312 = vmatprep.subr.bf16.mxu1 %v2311_v41  ;;  %v2349_v25 = vpack.c.bf16 %v847_v12, %v846_v11  ;;  %v2323_v27 = vpack.c.bf16 %v835_v17, %v834_v16  ;;  %v838_v42 = vld [vmem:[#allocation4 + $0x1c0] sm:$0xff]  ;;  %v839_v43 = vld [vmem:[#allocation4 + $0x1c8] sm:$0xff]  ;;  %v869_v48 = vld [vmem:[#allocation4 + $0x2b8] sm:$0xff]  ;;  %v2329_v49 = vpack.c.bf16 %v821_v37, %v820_v36  ;;  %p2465_p12 = pnand %p2464_p11, %p2458_p8 }
  0x37   :  { %2282 = vmatpush3.bf16.msra.mxu0 %v2279_v32  ;;  %v837_v32 = vld [vmem:[#allocation4 + $0x1b8] sm:$0xff]  ;;  %v822_v53 = vld [vmem:[#allocation4 + $0x140] sm:$0xff]  ;;  %v823_v54 = vld [vmem:[#allocation4 + $0x148] sm:$0xff] }
  0x38   :  { %2314 = vmatpush3.bf16.msra.mxu1 %v2313_v44  ;;  %2316 = vmatprep.subr.bf16.mxu0 %v2315_v45  ;;  %v2327_v41 = vpack.c.bf16 %v837_v32, %v836_v30  ;;  %v2355_v44 = vpack.c.bf16 %v867_v34, %v866_v33  ;;  %v850_v45 = vld [vmem:[#allocation4 + $0x220] sm:$0xff]  ;;  %v841_v58 = vld [vmem:[#allocation4 + $0x1d8] sm:$0xff]  ;;  %v871_v62 = vld [vmem:[#allocation4 + $0x2c8] sm:$0xff]  ;;  %v2333_v5 = vpack.c.bf16 %v823_v54, %v822_v53 }
  0x39   :  { %369 = vperm.xlu1 %2434, %v333_v24   ;;  %89 = vperm.xlu0 %2433, %v46_v28   ;;  %v848_v28 = vld [vmem:[#allocation4 + $0x210] sm:$0xff]  ;;  %v870_v61 = vld [vmem:[#allocation4 + $0x2c0] sm:$0xff]  ;;  %v855_v12 = vld [vmem:[#allocation4 + $0x248] sm:$0xff] }
  0x3a   :  { %2348 = vmatprep.subr.bf16.mxu1 %v2347_v50  ;;  %v2353_v40 = vpack.c.bf16 %v849_v29, %v848_v28  ;;  %v842_v7 = vld [vmem:[#allocation4 + $0x1e0] sm:$0xff]  ;;  %v2363_v11 = vpack.c.bf16 %v871_v62, %v870_v61  ;;  %v872_v13 = vld [vmem:[#allocation4 + $0x2d0] sm:$0xff]  ;;  %v827_v17 = vld [vmem:[#allocation4 + $0x168] sm:$0xff]  ;;  %v2790_v62 = vadd.s32 384, %v2699_v3 }
  0x3b   :  { %v826_v16 = vld [vmem:[#allocation4 + $0x160] sm:$0xff]  ;;  %v844_v22 = vld [vmem:[#allocation4 + $0x1f0] sm:$0xff]  ;;  %v857_v28 = vld [vmem:[#allocation4 + $0x258] sm:$0xff] }
  0x3c   :  { %v874_v29 = vld [vmem:[#allocation4 + $0x2e0] sm:$0xff]  ;;  %v875_v30 = vld [vmem:[#allocation4 + $0x2e8] sm:$0xff]  ;;  %v861_v53 = vld [vmem:[#allocation4 + $0x278] sm:$0xff] }
  0x3d   :  { %95 = vperm.xlu1 %2434, %v48_v38   ;;  %92 = vperm.xlu0 %2433, %v47_v39   ;;  %v2371_v37 = vpack.c.bf16 %v875_v30, %v874_v29  ;;  %v884_v29 = vld [vmem:[#allocation4 + $0x330] sm:$0xff]  ;;  %v885_v30 = vld [vmem:[#allocation4 + $0x338] sm:$0xff] }
  0x41   :  { %98 = vperm.xlu1 %2434, %v49_v47   ;;  %372 = vperm.xlu0 %2433, %v334_v46   ;;  %v851_v46 = vld [vmem:[#allocation4 + $0x228] sm:$0xff]  ;;  %v868_v47 = vld [vmem:[#allocation4 + $0x2b0] sm:$0xff] }
  0x42   :  { %v2359_v57 = vpack.c.bf16 %v869_v48, %v868_v47  ;;  %v876_v48 = vld [vmem:[#allocation4 + $0x2f0] sm:$0xff] }
  0x45   :  { %378 = vperm.xlu1 %2434, %v336_v51   ;;  %375 = vperm.xlu0 %2433, %v335_v52   ;;  %v2331_v52 = vpack.c.bf16 %v839_v43, %v838_v42  ;;  %v894_v42 = vld [vmem:[#allocation4 + $0x380] sm:$0xff]  ;;  %v895_v43 = vld [vmem:[#allocation4 + $0x388] sm:$0xff] }
  0x49   :  { %384 = vperm.xlu1 %2434, %v338_v55   ;;  %381 = vperm.xlu0 %2433, %v337_v56   ;;  %v2357_v55 = vpack.c.bf16 %v851_v46, %v850_v45  ;;  %v840_v56 = vld [vmem:[#allocation4 + $0x1d0] sm:$0xff] }
  0x4a   :  { %v2335_v6 = vpack.c.bf16 %v841_v58, %v840_v56 }
  0x4d   :  { %390 = vperm.xlu1 %2434, %v340_v59   ;;  %387 = vperm.xlu0 %2433, %v339_v60   ;;  %v852_v59 = vld [vmem:[#allocation4 + $0x230] sm:$0xff]  ;;  %v853_v60 = vld [vmem:[#allocation4 + $0x238] sm:$0xff] }
  0x51   :  { %396 = vperm.xlu1 %2434, %v342_v63   ;;  %393 = vperm.xlu0 %2433, %v341_v0   ;;  %v824_v63 = vld [vmem:[#allocation4 + $0x150] sm:$0xff]  ;;  %v825_v0 = vld [vmem:[#allocation4 + $0x158] sm:$0xff] }
  0x52   :  { %v2337_v15 = vpack.c.bf16 %v825_v0, %v824_v63 }
  0x94   :  { %v57_v8 = vpop.permute.xlu1 %56  ;;  %v54_v9 = vpop.permute.xlu0 %53 }
  0x95   :  { %vm101_vm0 = vcmp.eq.s32.totalorder %v57_v8, %v2699_v3  ;;  %vm100_vm1 = vcmp.eq.s32.totalorder %v54_v9, %v2699_v3  ;;  %v843_v8 = vld [vmem:[#allocation4 + $0x1e8] sm:$0xff]  ;;  %v2361_v9 = vpack.c.bf16 %v853_v60, %v852_v59 }
  0x96   :  { %2227 = vmatprep.mubr.msk.f32.mxu0 %vm100_vm1, %v2487_v18  ;;  %v2339_v21 = vpack.c.bf16 %v843_v8, %v842_v7  ;;  %v897_v7 = vld [vmem:[#allocation4 + $0x398] sm:$0xff] }
  0x97   :  { %2228 = vmatmul.mubr.msk.f32.vlgmr.msra.gmra.mrb[0].mxu0 %vm101_vm0, %v2487_v18 }
  0x98   :  { %v60_v23 = vpop.permute.xlu1 %59  ;;  %v2708_v24 = vpop.permute.xlu0 %351  ;;  %2318 = vmatpush3.bf16.msra.mxu0 %v2317_v10  ;;  %v854_v10 = vld [vmem:[#allocation4 + $0x240] sm:$0xff] }
  0x99   :  { %vm102_vm2 = vcmp.eq.s32.totalorder %v60_v23, %v2699_v3  ;;  %vm399_vm3 = vcmp.eq.s32.totalorder %v2708_v24, %v2704_v1  ;;  %vm398_vm4 = vcmp.eq.s32.totalorder %v2708_v24, %v2699_v3  ;;  %2320 = vmatprep.subr.bf16.mxu0 %v2319_v14  ;;  %v873_v14 = vld [vmem:[#allocation4 + $0x2d8] sm:$0xff] }
  0x9a   :  { %2230 = vmatprep.mubr.msk.f32.mxu0 %vm102_vm2, %v2487_v18  ;;  %1715 = vmatprep.mubr.msk.f32.mxu1 %vm399_vm3, %v2487_v18  ;;  %v845_v23 = vld [vmem:[#allocation4 + $0x1f8] sm:$0xff] }
  0x9b   :  { %1716 = vmatmul.mubr.msk.f32.vlgmr.msra.gmra.mrb[0].mxu1 %vm398_vm4, %v2487_v18  ;;  %v2343_v34 = vpack.c.bf16 %v845_v23, %v844_v22  ;;  %v883_v22 = vld [vmem:[#allocation4 + $0x328] sm:$0xff]  ;;  %v900_v23 = vld [vmem:[#allocation4 + $0x3b0] sm:$0xff] }
  0x9c   :  { %v63_v38 = vpop.permute.xlu1 %62  ;;  %v2718_v39 = vpop.permute.xlu0 %354  ;;  %2350 = vmatpush3.bf16.msra.mxu1 %v2349_v25  ;;  %2322 = vmatpush3.bf16.msra.mxu0 %v2321_v26  ;;  %v2365_v25 = vpack.c.bf16 %v855_v12, %v854_v10  ;;  %v2367_v26 = vpack.c.bf16 %v873_v14, %v872_v13  ;;  %v880_v12 = vld [vmem:[#allocation4 + $0x310] sm:$0xff]  ;;  %v881_v13 = vld [vmem:[#allocation4 + $0x318] sm:$0xff]  ;;  %v898_v14 = vld [vmem:[#allocation4 + $0x3a0] sm:$0xff] }
  0x9d   :  { %vm103_vm5 = vcmp.eq.s32.totalorder %v63_v38, %v2699_v3  ;;  %vm407_vm6 = vcmp.eq.s32.totalorder %v2718_v39, %v2704_v1  ;;  %vm406_vm7 = vcmp.eq.s32.totalorder %v2718_v39, %v2699_v3  ;;  %2324 = vmatprep.subr.bf16.mxu0 %v2323_v27  ;;  %2352 = vmatprep.subr.bf16.mxu1 %v2351_v31  ;;  %v856_v27 = vld [vmem:[#allocation4 + $0x250] sm:$0xff]  ;;  %v829_v38 = vld [vmem:[#allocation4 + $0x178] sm:$0xff] }
  0x9e   :  { %2231 = vmatmul.mubr.msk.f32.gmra.mrb[2].mxu0 %vm103_vm5, %v2487_v18  ;;  %1717 = vmatprep.mubr.msk.f32.mxu1 %vm407_vm6, %v2487_v18  ;;  %v2341_v31 = vpack.c.bf16 %v827_v17, %v826_v16  ;;  %v2369_v36 = vpack.c.bf16 %v857_v28, %v856_v27  ;;  %v2835_v17 = vpack.c.bf16 %v881_v13, %v880_v12 }
  0x9f   :  { %1718 = vmatmul.mubr.msk.f32.gmra.mrb[2].mxu1 %vm406_vm7, %v2487_v18 }
  0xa0   :  { %v2728_v50 = vpop.permute.xlu1 %357  ;;  %v66_v51 = vpop.permute.xlu0 %65  ;;  %2326 = vmatpush3.bf16.msra.mxu0 %v2325_v35  ;;  %2354 = vmatpush3.bf16.msra.mxu1 %v2353_v40  ;;  %v828_v35 = vld [vmem:[#allocation4 + $0x170] sm:$0xff]  ;;  %v858_v40 = vld [vmem:[#allocation4 + $0x260] sm:$0xff] }
  0xa1   :  { %vm104_vm8 = vcmp.eq.s32.totalorder %v66_v51, %v2699_v3  ;;  %vm415_vm9 = vcmp.eq.s32.totalorder %v2728_v50, %v2704_v1  ;;  %vm414_vm10 = vcmp.eq.s32.totalorder %v2728_v50, %v2699_v3  ;;  %2328 = vmatprep.subr.bf16.mxu0 %v2327_v41  ;;  %2356 = vmatprep.subr.bf16.mxu1 %v2355_v44  ;;  %v859_v41 = vld [vmem:[#allocation4 + $0x268] sm:$0xff] }
  0xa2   :  { %2233 = vmatprep.mubr.msk.f32.mxu0 %vm104_vm8, %v2487_v18  ;;  %1719 = vmatprep.mubr.msk.f32.mxu1 %vm415_vm9, %v2487_v18  ;;  %v2345_v46 = vpack.c.bf16 %v829_v38, %v828_v35  ;;  %v2373_v47 = vpack.c.bf16 %v859_v41, %v858_v40  ;;  %v2379_v51 = vpack.c.bf16 %v895_v43, %v894_v42  ;;  %v887_v38 = vld [vmem:[#allocation4 + $0x348] sm:$0xff]  ;;  %v904_v40 = vld [vmem:[#allocation4 + $0x3d0] sm:$0xff]  ;;  %v905_v41 = vld [vmem:[#allocation4 + $0x3d8] sm:$0xff] }
  0xa3   :  { %1720 = vmatmul.mubr.msk.f32.gmra.mrb[4].mxu1 %vm414_vm10, %v2487_v18  ;;  %v2875_v35 = vpack.c.bf16 %v885_v30, %v884_v29 }
  0xa4   :  { %v72_v2 = vpop.permute.xlu1 %71  ;;  %v69_v4 = vpop.permute.xlu0 %68  ;;  %2330 = vmatpush3.bf16.msra.mxu0 %v2329_v49  ;;  %2358 = vmatpush3.bf16.msra.mxu1 %v2357_v55  ;;  %v877_v49 = vld [vmem:[#allocation4 + $0x2f8] sm:$0xff] }
  0xa5   :  { %vm106_vm11 = vcmp.eq.s32.totalorder %v72_v2, %v2699_v3  ;;  %vm105_vm12 = vcmp.eq.s32.totalorder %v69_v4, %v2699_v3  ;;  %2332 = vmatprep.subr.bf16.mxu0 %v2331_v52  ;;  %2360 = vmatprep.subr.bf16.mxu1 %v2359_v57  ;;  %v860_v52 = vld [vmem:[#allocation4 + $0x270] sm:$0xff]  ;;  %v2375_v54 = vpack.c.bf16 %v877_v49, %v876_v48  ;;  %v2801_v2 = vadd.s32 256, %v2699_v3  ;;  %v878_v4 = vld [vmem:[#allocation4 + $0x300] sm:$0xff]  ;;  %v907_v48 = vld [vmem:[#allocation4 + $0x3e8] sm:$0xff] }
  0xa6   :  { %2234 = vmatmul.mubr.msk.f32.gmra.mrb[4].mxu0 %vm105_vm12, %v2487_v18  ;;  %v2377_v57 = vpack.c.bf16 %v861_v53, %v860_v52  ;;  %v890_v53 = vld [vmem:[#allocation4 + $0x360] sm:$0xff] }
  0xa7   :  { %2236 = vmatprep.mubr.msk.f32.mxu0 %vm106_vm11, %v2487_v18 }
  0xa8   :  { %v75_v19 = vpop.permute.xlu1 %74  ;;  %v2742_v20 = vpop.permute.xlu0 %360  ;;  %2334 = vmatpush3.bf16.msra.mxu0 %v2333_v5  ;;  %2362 = vmatpush3.bf16.msra.mxu1 %v2361_v9  ;;  %v879_v5 = vld [vmem:[#allocation4 + $0x308] sm:$0xff] }
  0xa9   :  { %vm107_vm13 = vcmp.eq.s32.totalorder %v75_v19, %v2699_v3  ;;  %vm423_vm14 = vcmp.eq.s32.totalorder %v2742_v20, %v2704_v1  ;;  %vm422_vm15 = vcmp.eq.s32.totalorder %v2742_v20, %v2699_v3  ;;  %2336 = vmatprep.subr.bf16.mxu0 %v2335_v6  ;;  %2364 = vmatprep.subr.bf16.mxu1 %v2363_v11  ;;  %v896_v6 = vld [vmem:[#allocation4 + $0x390] sm:$0xff] }
  0xaa   :  { %2237 = vmatmul.mubr.msk.f32.gmra.mrb[6].mxu0 %vm107_vm13, %v2487_v18  ;;  %1721 = vmatprep.mubr.msk.f32.mxu1 %vm423_vm14, %v2487_v18  ;;  %v2813_v10 = vpack.c.bf16 %v879_v5, %v878_v4  ;;  %v2821_v11 = vpack.c.bf16 %v897_v7, %v896_v6  ;;  %v893_v4 = vld [vmem:[#allocation4 + $0x378] sm:$0xff]  ;;  %v2952_v5 = vadd.s32 640, %v2699_v3  ;;  %v3067_v7 = vadd.s32 896, %v2699_v3 }
  0xab   :  { %1722 = vmatmul.mubr.msk.f32.gmra.mrb[6].mxu1 %vm422_vm15, %v2487_v18 }
  0xac   :  { %v2752_v32 = vpop.permute.xlu1 %363  ;;  %v78_v33 = vpop.permute.xlu0 %77  ;;  %2338 = vmatpush3.bf16.msra.mxu0 %v2337_v15  ;;  %2366 = vmatpush3.bf16.msra.mxu1 %v2365_v25  ;;  %v899_v15 = vld [vmem:[#allocation4 + $0x3a8] sm:$0xff]  ;;  %v901_v25 = vld [vmem:[#allocation4 + $0x3b8] sm:$0xff] }
  0xad   :  { %vm108_vm0 = vcmp.eq.s32.totalorder %v78_v33, %v2699_v3  ;;  %vm431_vm1 = vcmp.eq.s32.totalorder %v2752_v32, %v2704_v1  ;;  %vm430_vm2 = vcmp.eq.s32.totalorder %v2752_v32, %v2699_v3  ;;  %2340 = vmatprep.subr.bf16.mxu0 %v2339_v21  ;;  %2368 = vmatprep.subr.bf16.mxu1 %v2367_v26  ;;  %v882_v21 = vld [vmem:[#allocation4 + $0x320] sm:$0xff]  ;;  %v903_v33 = vld [vmem:[#allocation4 + $0x3c8] sm:$0xff] }
  0xae   :  { %2239 = vmatprep.mubr.msk.f32.mxu0 %vm108_vm0, %v2487_v18  ;;  %1723 = vmatprep.mubr.msk.f32.mxu1 %vm431_vm1, %v2487_v18  ;;  %vm401_vm0 = vcmp.eq.s32.totalorder %v2708_v24, %v2790_v62  ;;  %v2840_v19 = vpack.c.bf16 %v899_v15, %v898_v14  ;;  %v2855_v27 = vpack.c.bf16 %v883_v22, %v882_v21 }
  0xaf   :  { %1724 = vmatmul.mubr.msk.f32.gmra.mrb[8].mxu1 %vm430_vm2, %v2487_v18  ;;  %vm400_vm2 = vcmp.eq.s32.totalorder %v2708_v24, %v2801_v2  ;;  %v2860_v28 = vpack.c.bf16 %v901_v25, %v900_v23 }
  0xb0   :  { %v84_v44 = vpop.permute.xlu1 %83  ;;  %v81_v45 = vpop.permute.xlu0 %80  ;;  %2342 = vmatpush3.bf16.msra.mxu0 %v2341_v31  ;;  %2370 = vmatpush3.bf16.msra.mxu1 %v2369_v36  ;;  %v902_v31 = vld [vmem:[#allocation4 + $0x3c0] sm:$0xff] }
  0xb1   :  { %vm110_vm3 = vcmp.eq.s32.totalorder %v84_v44, %v2699_v3  ;;  %vm109_vm4 = vcmp.eq.s32.totalorder %v81_v45, %v2699_v3  ;;  %2344 = vmatprep.subr.bf16.mxu0 %v2343_v34  ;;  %2372 = vmatprep.subr.bf16.mxu1 %v2371_v37  ;;  %v2880_v36 = vpack.c.bf16 %v903_v33, %v902_v31  ;;  %v886_v37 = vld [vmem:[#allocation4 + $0x340] sm:$0xff]  ;;  %v888_v45 = vld [vmem:[#allocation4 + $0x350] sm:$0xff] }
  0xb2   :  { %2240 = vmatmul.mubr.msk.f32.gmra.mrb[8].mxu0 %vm109_vm4, %v2487_v18  ;;  %vm409_vm4 = vcmp.eq.s32.totalorder %v2718_v39, %v2790_v62  ;;  %v2895_v43 = vpack.c.bf16 %v887_v38, %v886_v37  ;;  %v2900_v44 = vpack.c.bf16 %v905_v41, %v904_v40 }
  0xb3   :  { %2242 = vmatprep.mubr.msk.f32.mxu0 %vm110_vm3, %v2487_v18 }
  0xb4   :  { %v87_v55 = vpop.permute.xlu1 %86  ;;  %v2766_v56 = vpop.permute.xlu0 %366  ;;  %2346 = vmatpush3.bf16.msra.mxu0 %v2345_v46  ;;  %2374 = vmatpush3.bf16.msra.mxu1 %v2373_v47  ;;  %v889_v46 = vld [vmem:[#allocation4 + $0x358] sm:$0xff]  ;;  %v906_v47 = vld [vmem:[#allocation4 + $0x3e0] sm:$0xff] }
  0xb5   :  { %vm111_vm5 = vcmp.eq.s32.totalorder %v87_v55, %v2699_v3  ;;  %vm439_vm6 = vcmp.eq.s32.totalorder %v2766_v56, %v2704_v1  ;;  %vm438_vm7 = vcmp.eq.s32.totalorder %v2766_v56, %v2699_v3  ;;  %2380 = vmatprep.subr.bf16.mxu0 %v2379_v51  ;;  %2376 = vmatprep.subr.bf16.mxu1 %v2375_v54  ;;  %v891_v54 = vld [vmem:[#allocation4 + $0x368] sm:$0xff]  ;;  %v908_v55 = vld [vmem:[#allocation4 + $0x3f0] sm:$0xff] }
  0xb6   :  { %2243 = vmatmul.mubr.msk.f32.gmra.mrb[10].mxu0 %vm111_vm5, %v2487_v18  ;;  %1725 = vmatprep.mubr.msk.f32.mxu1 %vm439_vm6, %v2487_v18  ;;  %vm408_vm6 = vcmp.eq.s32.totalorder %v2718_v39, %v2801_v2  ;;  %v2920_v52 = vpack.c.bf16 %v907_v48, %v906_v47 }
  0xb7   :  { %1726 = vmatmul.mubr.msk.f32.gmra.mrb[10].mxu1 %vm438_vm7, %v2487_v18 }
  0xb8   :  { %v2776_v58 = vpop.permute.xlu1 %369  ;;  %v90_v59 = vpop.permute.xlu0 %89  ;;  %2378 = vmatpush3.bf16.msra.mxu1 %v2377_v57  ;;  %v909_v57 = vld [vmem:[#allocation4 + $0x3f8] sm:$0xff] }
  0xb9   :  { %vm112_vm8 = vcmp.eq.s32.totalorder %v90_v59, %v2699_v3  ;;  %vm447_vm9 = vcmp.eq.s32.totalorder %v2776_v58, %v2704_v1  ;;  %vm446_vm10 = vcmp.eq.s32.totalorder %v2776_v58, %v2699_v3  ;;  %2411 = vmatprep.subr.bf16.mxu1 %v2379_v51  ;;  %v2915_v51 = vpack.c.bf16 %v889_v46, %v888_v45 }
  0xba   :  { %2245 = vmatprep.mubr.msk.f32.mxu0 %vm112_vm8, %v2487_v18  ;;  %1727 = vmatprep.mubr.msk.f32.mxu1 %vm447_vm9, %v2487_v18  ;;  %vm417_vm8 = vcmp.eq.s32.totalorder %v2728_v50, %v2790_v62 }
  0xbb   :  { %1728 = vmatmul.mubr.msk.f32.gmra.mrb[12].mxu1 %vm446_vm10, %v2487_v18  ;;  %vm416_vm10 = vcmp.eq.s32.totalorder %v2728_v50, %v2801_v2 }
  0xbc   :  { %v96_v60 = vpop.permute.xlu1 %95  ;;  %v93_v61 = vpop.permute.xlu0 %92 }
  0xbd   :  { %vm114_vm11 = vcmp.eq.s32.totalorder %v96_v60, %v2699_v3  ;;  %vm113_vm12 = vcmp.eq.s32.totalorder %v93_v61, %v2699_v3  ;;  %v2935_v60 = vpack.c.bf16 %v891_v54, %v890_v53  ;;  %v2940_v61 = vpack.c.bf16 %v909_v57, %v908_v55 }
  0xbe   :  { %2246 = vmatmul.mubr.msk.f32.gmra.mrb[12].mxu0 %vm113_vm12, %v2487_v18  ;;  %vm425_vm12 = vcmp.eq.s32.totalorder %v2742_v20, %v2790_v62 }
  0xbf   :  { %2248 = vmatprep.mubr.msk.f32.mxu0 %vm114_vm11, %v2487_v18 }
  0xc0   :  { %v99_v63 = vpop.permute.xlu1 %98  ;;  %v2793_v0 = vpop.permute.xlu0 %372 }
  0xc1   :  { %vm115_vm13 = vcmp.eq.s32.totalorder %v99_v63, %v2699_v3  ;;  %vm455_vm14 = vcmp.eq.s32.totalorder %v2793_v0, %v2704_v1  ;;  %vm454_vm15 = vcmp.eq.s32.totalorder %v2793_v0, %v2699_v3  ;;  %v892_v63 = vld [vmem:[#allocation4 + $0x370] sm:$0xff] }
  0xc2   :  { %2249 = vmatmul.mubr.msk.f32.gmra.mrb[14].mxu0 %vm115_vm13, %v2487_v18  ;;  %1729 = vmatprep.mubr.msk.f32.mxu1 %vm455_vm14, %v2487_v18  ;;  %vm424_vm14 = vcmp.eq.s32.totalorder %v2742_v20, %v2801_v2  ;;  %v2956_v6 = vpack.c.bf16 %v893_v4, %v892_v63 }
  0xc3   :  { %1730 = vmatmul.mubr.msk.f32.gmra.mrb[14].mxu1 %vm454_vm15, %v2487_v18  ;;  %1747 = vmatprep.mubr.msk.f32.mxu0 %vm401_vm0, %v2487_v18  ;;  %vm433_vm0 = vcmp.eq.s32.totalorder %v2752_v32, %v2790_v62 }
  0xc4   :  { %v2809_v8 = vpop.permute.xlu1 %378  ;;  %v2811_v9 = vpop.permute.xlu0 %375 }
  0xc5   :  { %vm463_vm1 = vcmp.eq.s32.totalorder %v2811_v9, %v2704_v1  ;;  %vm462_vm3 = vcmp.eq.s32.totalorder %v2811_v9, %v2699_v3  ;;  %vm471_vm5 = vcmp.eq.s32.totalorder %v2809_v8, %v2704_v1  ;;  %vm470_vm7 = vcmp.eq.s32.totalorder %v2809_v8, %v2699_v3 }
  0xc6   :  { %1731 = vmatprep.mubr.msk.f32.mxu1 %vm463_vm1, %v2487_v18  ;;  %1748 = vmatmul.mubr.msk.f32.vlgmr.msra.gmra.mrb[16].mxu0 %vm400_vm2, %v2487_v18  ;;  %vm432_vm2 = vcmp.eq.s32.totalorder %v2752_v32, %v2801_v2 }
  0xc7   :  { %1732 = vmatmul.mubr.msk.f32.gmra.mrb[16].mxu1 %vm462_vm3, %v2487_v18  ;;  %1749 = vmatprep.mubr.msk.f32.mxu0 %vm409_vm4, %v2487_v18  ;;  %vm441_vm4 = vcmp.eq.s32.totalorder %v2766_v56, %v2790_v62 }
  0xc8   :  { %2382 = vmatpush3.bf16.msra.mxu0 %v2813_v10  ;;  %1733 = vmatprep.mubr.msk.f32.mxu1 %vm471_vm5, %v2487_v18  ;;  %v2833_v16 = vpop.permute.xlu0 %381  ;;  %v2851_v26 = vpop.permute.xlu1 %384 }
  0xc9   :  { %2384 = vmatprep.subr.bf16.mxu0 %v2821_v11  ;;  %vm479_vm9 = vcmp.eq.s32.totalorder %v2833_v16, %v2704_v1  ;;  %vm478_vm11 = vcmp.eq.s32.totalorder %v2833_v16, %v2699_v3  ;;  %vm487_vm13 = vcmp.eq.s32.totalorder %v2851_v26, %v2704_v1  ;;  %vm486_vm15 = vcmp.eq.s32.totalorder %v2851_v26, %v2699_v3 }
  0xca   :  { %1750 = vmatmul.mubr.msk.f32.gmra.mrb[18].mxu0 %vm408_vm6, %v2487_v18  ;;  %vm440_vm6 = vcmp.eq.s32.totalorder %v2766_v56, %v2801_v2 }
  0xcb   :  { %1734 = vmatmul.mubr.msk.f32.gmra.mrb[18].mxu1 %vm470_vm7, %v2487_v18  ;;  %1751 = vmatprep.mubr.msk.f32.mxu0 %vm417_vm8, %v2487_v18  ;;  %vm449_vm8 = vcmp.eq.s32.totalorder %v2776_v58, %v2790_v62 }
  0xcc   :  { %1735 = vmatprep.mubr.msk.f32.mxu1 %vm479_vm9, %v2487_v18  ;;  %2386 = vmatpush3.bf16.msra.mxu0 %v2835_v17  ;;  %v2871_v34 = vpop.permute.xlu0 %387  ;;  %v2891_v42 = vpop.permute.xlu1 %390 }
  0xcd   :  { %2388 = vmatprep.subr.bf16.mxu0 %v2840_v19  ;;  %vm495_vm1 = vcmp.eq.s32.totalorder %v2871_v34, %v2704_v1  ;;  %vm494_vm3 = vcmp.eq.s32.totalorder %v2871_v34, %v2699_v3  ;;  %vm503_vm5 = vcmp.eq.s32.totalorder %v2891_v42, %v2704_v1  ;;  %vm502_vm7 = vcmp.eq.s32.totalorder %v2891_v42, %v2699_v3 }
  0xce   :  { %1752 = vmatmul.mubr.msk.f32.gmra.mrb[20].mxu0 %vm416_vm10, %v2487_v18  ;;  %vm448_vm10 = vcmp.eq.s32.totalorder %v2776_v58, %v2801_v2 }
  0xcf   :  { %1736 = vmatmul.mubr.msk.f32.gmra.mrb[20].mxu1 %vm478_vm11, %v2487_v18  ;;  %1753 = vmatprep.mubr.msk.f32.mxu0 %vm425_vm12, %v2487_v18  ;;  %vm457_vm12 = vcmp.eq.s32.totalorder %v2793_v0, %v2790_v62 }
  0xd0   :  { %1737 = vmatprep.mubr.msk.f32.mxu1 %vm487_vm13, %v2487_v18  ;;  %2390 = vmatpush3.bf16.msra.mxu0 %v2855_v27  ;;  %v2911_v49 = vpop.permute.xlu0 %393  ;;  %v2931_v59 = vpop.permute.xlu1 %396 }
  0xd1   :  { %2392 = vmatprep.subr.bf16.mxu0 %v2860_v28  ;;  %vm511_vm9 = vcmp.eq.s32.totalorder %v2911_v49, %v2704_v1  ;;  %vm510_vm11 = vcmp.eq.s32.totalorder %v2911_v49, %v2699_v3  ;;  %vm519_vm13 = vcmp.eq.s32.totalorder %v2931_v59, %v2704_v1  ;;  %v2967_v1 = vadd.s32 512, %v2699_v3 }
  0xd2   :  { %1754 = vmatmul.mubr.msk.f32.gmra.mrb[22].mxu0 %vm424_vm14, %v2487_v18  ;;  %vm456_vm14 = vcmp.eq.s32.totalorder %v2793_v0, %v2801_v2 }
  0xd3   :  { %1738 = vmatmul.mubr.msk.f32.gmra.mrb[22].mxu1 %vm486_vm15, %v2487_v18  ;;  %1755 = vmatprep.mubr.msk.f32.mxu0 %vm433_vm0, %v2487_v18  ;;  %vm518_vm15 = vcmp.eq.s32.totalorder %v2931_v59, %v2699_v3  ;;  %vm465_vm0 = vcmp.eq.s32.totalorder %v2811_v9, %v2790_v62 }
  0xd4   :  { %1739 = vmatprep.mubr.msk.f32.mxu1 %vm495_vm1, %v2487_v18  ;;  %2394 = vmatpush3.bf16.msra.mxu0 %v2875_v35  ;;  %vm403_vm1 = vcmp.eq.s32.totalorder %v2708_v24, %v2952_v5 }
  0xd5   :  { %2396 = vmatprep.subr.bf16.mxu0 %v2880_v36 }
  0xd6   :  { %1756 = vmatmul.mubr.msk.f32.gmra.mrb[24].mxu0 %vm432_vm2, %v2487_v18  ;;  %vm464_vm2 = vcmp.eq.s32.totalorder %v2811_v9, %v2801_v2 }
  0xd7   :  { %1740 = vmatmul.mubr.msk.f32.gmra.mrb[24].mxu1 %vm494_vm3, %v2487_v18  ;;  %1757 = vmatprep.mubr.msk.f32.mxu0 %vm441_vm4, %v2487_v18  ;;  %vm473_vm3 = vcmp.eq.s32.totalorder %v2809_v8, %v2790_v62  ;;  %vm402_vm4 = vcmp.eq.s32.totalorder %v2708_v24, %v2967_v1 }
  0xd8   :  { %1741 = vmatprep.mubr.msk.f32.mxu1 %vm503_vm5, %v2487_v18  ;;  %2398 = vmatpush3.bf16.msra.mxu0 %v2895_v43  ;;  %vm411_vm5 = vcmp.eq.s32.totalorder %v2718_v39, %v2952_v5 }
  0xd9   :  { %2400 = vmatprep.subr.bf16.mxu0 %v2900_v44 }
  0xda   :  { %1758 = vmatmul.mubr.msk.f32.gmra.mrb[26].mxu0 %vm440_vm6, %v2487_v18  ;;  %vm472_vm6 = vcmp.eq.s32.totalorder %v2809_v8, %v2801_v2 }
  0xdb   :  { %1742 = vmatmul.mubr.msk.f32.gmra.mrb[26].mxu1 %vm502_vm7, %v2487_v18  ;;  %1759 = vmatprep.mubr.msk.f32.mxu0 %vm449_vm8, %v2487_v18  ;;  %vm481_vm7 = vcmp.eq.s32.totalorder %v2833_v16, %v2790_v62  ;;  %vm410_vm8 = vcmp.eq.s32.totalorder %v2718_v39, %v2967_v1 }
  0xdc   :  { %1743 = vmatprep.mubr.msk.f32.mxu1 %vm511_vm9, %v2487_v18  ;;  %2402 = vmatpush3.bf16.msra.mxu0 %v2915_v51  ;;  %vm419_vm9 = vcmp.eq.s32.totalorder %v2728_v50, %v2952_v5 }
  0xdd   :  { %2404 = vmatprep.subr.bf16.mxu0 %v2920_v52 }
  0xde   :  { %1760 = vmatmul.mubr.msk.f32.gmra.mrb[28].mxu0 %vm448_vm10, %v2487_v18  ;;  %vm480_vm10 = vcmp.eq.s32.totalorder %v2833_v16, %v2801_v2 }
  0xdf   :  { %1744 = vmatmul.mubr.msk.f32.gmra.mrb[28].mxu1 %vm510_vm11, %v2487_v18  ;;  %1761 = vmatprep.mubr.msk.f32.mxu0 %vm457_vm12, %v2487_v18  ;;  %vm489_vm11 = vcmp.eq.s32.totalorder %v2851_v26, %v2790_v62  ;;  %vm418_vm12 = vcmp.eq.s32.totalorder %v2728_v50, %v2967_v1 }
  0xe0   :  { %1745 = vmatprep.mubr.msk.f32.mxu1 %vm519_vm13, %v2487_v18  ;;  %2406 = vmatpush3.bf16.msra.mxu0 %v2935_v60  ;;  %vm427_vm13 = vcmp.eq.s32.totalorder %v2742_v20, %v2952_v5 }
  0xe1   :  { %2408 = vmatprep.subr.bf16.mxu0 %v2940_v61 }
  0xe2   :  { %1762 = vmatmul.mubr.msk.f32.gmra.mrb[30].mxu0 %vm456_vm14, %v2487_v18  ;;  %vm488_vm14 = vcmp.eq.s32.totalorder %v2851_v26, %v2801_v2 }
  0xe3   :  { %1746 = vmatmul.mubr.msk.f32.gmra.mrb[30].mxu1 %vm518_vm15, %v2487_v18  ;;  %1763 = vmatprep.mubr.msk.f32.mxu0 %vm465_vm0, %v2487_v18  ;;  %vm497_vm15 = vcmp.eq.s32.totalorder %v2871_v34, %v2790_v62  ;;  %vm426_vm0 = vcmp.eq.s32.totalorder %v2742_v20, %v2967_v1 }
  0xe4   :  { %1779 = vmatprep.mubr.msk.f32.mxu1 %vm403_vm1, %v2487_v18  ;;  %2410 = vmatpush3.bf16.msra.mxu0 %v2956_v6  ;;  %vm435_vm1 = vcmp.eq.s32.totalorder %v2752_v32, %v2952_v5 }
  0xe6   :  { %1764 = vmatmul.mubr.msk.f32.gmra.mrb[32].mxu0 %vm464_vm2, %v2487_v18  ;;  %vm496_vm2 = vcmp.eq.s32.totalorder %v2871_v34, %v2801_v2 }
  0xe7   :  { %1765 = vmatprep.mubr.msk.f32.mxu0 %vm473_vm3, %v2487_v18  ;;  %1780 = vmatmul.mubr.msk.f32.vlgmr.msra.gmra.mrb[32].mxu1 %vm402_vm4, %v2487_v18  ;;  %vm505_vm3 = vcmp.eq.s32.totalorder %v2891_v42, %v2790_v62  ;;  %vm434_vm4 = vcmp.eq.s32.totalorder %v2752_v32, %v2967_v1 }
  0xe8   :  { %2419 = vmatpush3.bf16.msra.mxu1 %v2813_v10  ;;  %1781 = vmatprep.mubr.msk.f32.mxu1 %vm411_vm5, %v2487_v18  ;;  %vm443_vm5 = vcmp.eq.s32.totalorder %v2766_v56, %v2952_v5 }
  0xe9   :  { %2412 = vmatprep.subr.bf16.mxu1 %v2821_v11 }
  0xea   :  { %1766 = vmatmul.mubr.msk.f32.gmra.mrb[34].mxu0 %vm472_vm6, %v2487_v18  ;;  %vm504_vm6 = vcmp.eq.s32.totalorder %v2891_v42, %v2801_v2 }
  0xeb   :  { %1767 = vmatprep.mubr.msk.f32.mxu0 %vm481_vm7, %v2487_v18  ;;  %1782 = vmatmul.mubr.msk.f32.gmra.mrb[34].mxu1 %vm410_vm8, %v2487_v18  ;;  %vm513_vm7 = vcmp.eq.s32.totalorder %v2911_v49, %v2790_v62  ;;  %vm442_vm8 = vcmp.eq.s32.totalorder %v2766_v56, %v2967_v1 }
  0xec   :  { %1783 = vmatprep.mubr.msk.f32.mxu1 %vm419_vm9, %v2487_v18  ;;  %2420 = vmatpush3.bf16.msra.mxu1 %v2835_v17  ;;  %vm451_vm9 = vcmp.eq.s32.totalorder %v2776_v58, %v2952_v5 }
  0xed   :  { %2413 = vmatprep.subr.bf16.mxu1 %v2840_v19 }
  0xee   :  { %1768 = vmatmul.mubr.msk.f32.gmra.mrb[36].mxu0 %vm480_vm10, %v2487_v18  ;;  %vm512_vm10 = vcmp.eq.s32.totalorder %v2911_v49, %v2801_v2 }
  0xef   :  { %1769 = vmatprep.mubr.msk.f32.mxu0 %vm489_vm11, %v2487_v18  ;;  %1784 = vmatmul.mubr.msk.f32.gmra.mrb[36].mxu1 %vm418_vm12, %v2487_v18  ;;  %vm521_vm11 = vcmp.eq.s32.totalorder %v2931_v59, %v2790_v62  ;;  %vm450_vm12 = vcmp.eq.s32.totalorder %v2776_v58, %v2967_v1  ;;  %v3078_v62 = vadd.s32 768, %v2699_v3 }
  0xf0   :  { %1785 = vmatprep.mubr.msk.f32.mxu1 %vm427_vm13, %v2487_v18  ;;  %2421 = vmatpush3.bf16.msra.mxu1 %v2855_v27  ;;  %vm459_vm13 = vcmp.eq.s32.totalorder %v2793_v0, %v2952_v5 }
  0xf1   :  { %2414 = vmatprep.subr.bf16.mxu1 %v2860_v28 }
  0xf2   :  { %1770 = vmatmul.mubr.msk.f32.gmra.mrb[38].mxu0 %vm488_vm14, %v2487_v18  ;;  %vm520_vm14 = vcmp.eq.s32.totalorder %v2931_v59, %v2801_v2 }
  0xf3   :  { %1771 = vmatprep.mubr.msk.f32.mxu0 %vm497_vm15, %v2487_v18  ;;  %1786 = vmatmul.mubr.msk.f32.gmra.mrb[38].mxu1 %vm426_vm0, %v2487_v18  ;;  %vm458_vm15 = vcmp.eq.s32.totalorder %v2793_v0, %v2967_v1  ;;  %vm405_vm0 = vcmp.eq.s32.totalorder %v2708_v24, %v3067_v7 }
  0xf4   :  { %1787 = vmatprep.mubr.msk.f32.mxu1 %vm435_vm1, %v2487_v18  ;;  %2422 = vmatpush3.bf16.msra.mxu1 %v2875_v35  ;;  %vm467_vm1 = vcmp.eq.s32.totalorder %v2811_v9, %v2952_v5 }
  0xf5   :  { %2415 = vmatprep.subr.bf16.mxu1 %v2880_v36 }
  0xf6   :  { %1772 = vmatmul.mubr.msk.f32.gmra.mrb[40].mxu0 %vm496_vm2, %v2487_v18  ;;  %vm404_vm2 = vcmp.eq.s32.totalorder %v2708_v24, %v3078_v62 }
  0xf7   :  { %1773 = vmatprep.mubr.msk.f32.mxu0 %vm505_vm3, %v2487_v18  ;;  %1788 = vmatmul.mubr.msk.f32.gmra.mrb[40].mxu1 %vm434_vm4, %v2487_v18  ;;  %vm466_vm3 = vcmp.eq.s32.totalorder %v2811_v9, %v2967_v1  ;;  %vm413_vm4 = vcmp.eq.s32.totalorder %v2718_v39, %v3067_v7 }
  0xf8   :  { %1789 = vmatprep.mubr.msk.f32.mxu1 %vm443_vm5, %v2487_v18  ;;  %2423 = vmatpush3.bf16.msra.mxu1 %v2895_v43  ;;  %vm475_vm5 = vcmp.eq.s32.totalorder %v2809_v8, %v2952_v5 }
  0xf9   :  { %2416 = vmatprep.subr.bf16.mxu1 %v2900_v44 }
  0xfa   :  { %1774 = vmatmul.mubr.msk.f32.gmra.mrb[42].mxu0 %vm504_vm6, %v2487_v18  ;;  %vm412_vm6 = vcmp.eq.s32.totalorder %v2718_v39, %v3078_v62 }
  0xfb   :  { %1775 = vmatprep.mubr.msk.f32.mxu0 %vm513_vm7, %v2487_v18  ;;  %1790 = vmatmul.mubr.msk.f32.gmra.mrb[42].mxu1 %vm442_vm8, %v2487_v18  ;;  %vm474_vm7 = vcmp.eq.s32.totalorder %v2809_v8, %v2967_v1  ;;  %vm421_vm8 = vcmp.eq.s32.totalorder %v2728_v50, %v3067_v7 }
  0xfc   :  { %1791 = vmatprep.mubr.msk.f32.mxu1 %vm451_vm9, %v2487_v18  ;;  %2424 = vmatpush3.bf16.msra.mxu1 %v2915_v51  ;;  %vm483_vm9 = vcmp.eq.s32.totalorder %v2833_v16, %v2952_v5 }
  0xfd   :  { %2417 = vmatprep.subr.bf16.mxu1 %v2920_v52 }
  0xfe   :  { %1776 = vmatmul.mubr.msk.f32.gmra.mrb[44].mxu0 %vm512_vm10, %v2487_v18  ;;  %vm420_vm10 = vcmp.eq.s32.totalorder %v2728_v50, %v3078_v62 }
  0xff   :  { %1777 = vmatprep.mubr.msk.f32.mxu0 %vm521_vm11, %v2487_v18  ;;  %1792 = vmatmul.mubr.msk.f32.gmra.mrb[44].mxu1 %vm450_vm12, %v2487_v18  ;;  %vm482_vm11 = vcmp.eq.s32.totalorder %v2833_v16, %v2967_v1  ;;  %vm429_vm12 = vcmp.eq.s32.totalorder %v2742_v20, %v3067_v7 }
 0x100   :  { %1793 = vmatprep.mubr.msk.f32.mxu1 %vm459_vm13, %v2487_v18  ;;  %2425 = vmatpush3.bf16.msra.mxu1 %v2935_v60  ;;  %vm491_vm13 = vcmp.eq.s32.totalorder %v2851_v26, %v2952_v5 }
 0x101   :  { %2418 = vmatprep.subr.bf16.mxu1 %v2940_v61 }
 0x102   :  { %1778 = vmatmul.mubr.msk.f32.gmra.mrb[46].mxu0 %vm520_vm14, %v2487_v18  ;;  %vm428_vm14 = vcmp.eq.s32.totalorder %v2742_v20, %v3078_v62 }
 0x103   :  { %1794 = vmatmul.mubr.msk.f32.gmra.mrb[46].mxu1 %vm458_vm15, %v2487_v18  ;;  %1811 = vmatprep.mubr.msk.f32.mxu0 %vm405_vm0, %v2487_v18  ;;  %vm490_vm15 = vcmp.eq.s32.totalorder %v2851_v26, %v2967_v1  ;;  %vm437_vm0 = vcmp.eq.s32.totalorder %v2752_v32, %v3067_v7 }
 0x104   :  { %1795 = vmatprep.mubr.msk.f32.mxu1 %vm467_vm1, %v2487_v18  ;;  %2426 = vmatpush3.bf16.msra.mxu1 %v2956_v6  ;;  %vm499_vm1 = vcmp.eq.s32.totalorder %v2871_v34, %v2952_v5 }
 0x106   :  { %1812 = vmatmul.mubr.msk.f32.vlgmr.msra.gmra.mrb[48].mxu0 %vm404_vm2, %v2487_v18  ;;  %vm436_vm2 = vcmp.eq.s32.totalorder %v2752_v32, %v3078_v62 }
 0x107   :  { %1796 = vmatmul.mubr.msk.f32.gmra.mrb[48].mxu1 %vm466_vm3, %v2487_v18  ;;  %1813 = vmatprep.mubr.msk.f32.mxu0 %vm413_vm4, %v2487_v18  ;;  %vm498_vm3 = vcmp.eq.s32.totalorder %v2871_v34, %v2967_v1  ;;  %vm445_vm4 = vcmp.eq.s32.totalorder %v2766_v56, %v3067_v7 }
 0x108   :  { %1797 = vmatprep.mubr.msk.f32.mxu1 %vm475_vm5, %v2487_v18  ;;  %vm507_vm5 = vcmp.eq.s32.totalorder %v2891_v42, %v2952_v5 }
 0x10a   :  { %1814 = vmatmul.mubr.msk.f32.gmra.mrb[50].mxu0 %vm412_vm6, %v2487_v18  ;;  %vm444_vm6 = vcmp.eq.s32.totalorder %v2766_v56, %v3078_v62 }
 0x10b   :  { %1798 = vmatmul.mubr.msk.f32.gmra.mrb[50].mxu1 %vm474_vm7, %v2487_v18  ;;  %1815 = vmatprep.mubr.msk.f32.mxu0 %vm421_vm8, %v2487_v18  ;;  %vm506_vm7 = vcmp.eq.s32.totalorder %v2891_v42, %v2967_v1  ;;  %vm453_vm8 = vcmp.eq.s32.totalorder %v2776_v58, %v3067_v7 }
 0x10c   :  { %1799 = vmatprep.mubr.msk.f32.mxu1 %vm483_vm9, %v2487_v18  ;;  %vm515_vm9 = vcmp.eq.s32.totalorder %v2911_v49, %v2952_v5 }
 0x10e   :  { %1816 = vmatmul.mubr.msk.f32.gmra.mrb[52].mxu0 %vm420_vm10, %v2487_v18  ;;  %vm452_vm10 = vcmp.eq.s32.totalorder %v2776_v58, %v3078_v62 }
 0x10f   :  { %1800 = vmatmul.mubr.msk.f32.gmra.mrb[52].mxu1 %vm482_vm11, %v2487_v18  ;;  %1817 = vmatprep.mubr.msk.f32.mxu0 %vm429_vm12, %v2487_v18  ;;  %vm514_vm11 = vcmp.eq.s32.totalorder %v2911_v49, %v2967_v1  ;;  %vm461_vm12 = vcmp.eq.s32.totalorder %v2793_v0, %v3067_v7 }
 0x110   :  { %1801 = vmatprep.mubr.msk.f32.mxu1 %vm491_vm13, %v2487_v18  ;;  %vm523_vm13 = vcmp.eq.s32.totalorder %v2931_v59, %v2952_v5 }
 0x112   :  { %1818 = vmatmul.mubr.msk.f32.gmra.mrb[54].mxu0 %vm428_vm14, %v2487_v18  ;;  %vm460_vm14 = vcmp.eq.s32.totalorder %v2793_v0, %v3078_v62 }
 0x113   :  { %1802 = vmatmul.mubr.msk.f32.gmra.mrb[54].mxu1 %vm490_vm15, %v2487_v18  ;;  %1819 = vmatprep.mubr.msk.f32.mxu0 %vm437_vm0, %v2487_v18  ;;  %vm522_vm15 = vcmp.eq.s32.totalorder %v2931_v59, %v2967_v1  ;;  %vm469_vm0 = vcmp.eq.s32.totalorder %v2811_v9, %v3067_v7 }
 0x114   :  { %1803 = vmatprep.mubr.msk.f32.mxu1 %vm499_vm1, %v2487_v18  ;;  %vm501_vm1 = vcmp.eq.s32.totalorder %v2871_v34, %v3067_v7 }
 0x116   :  { %1820 = vmatmul.mubr.msk.f32.gmra.mrb[56].mxu0 %vm436_vm2, %v2487_v18  ;;  %vm468_vm2 = vcmp.eq.s32.totalorder %v2811_v9, %v3078_v62 }
 0x117   :  { %1804 = vmatmul.mubr.msk.f32.gmra.mrb[56].mxu1 %vm498_vm3, %v2487_v18  ;;  %1821 = vmatprep.mubr.msk.f32.mxu0 %vm445_vm4, %v2487_v18  ;;  %vm477_vm3 = vcmp.eq.s32.totalorder %v2809_v8, %v3067_v7  ;;  %vm500_vm4 = vcmp.eq.s32.totalorder %v2871_v34, %v3078_v62 }
 0x118   :  { %1805 = vmatprep.mubr.msk.f32.mxu1 %vm507_vm5, %v2487_v18  ;;  %vm509_vm5 = vcmp.eq.s32.totalorder %v2891_v42, %v3067_v7 }
 0x11a   :  { %1822 = vmatmul.mubr.msk.f32.gmra.mrb[58].mxu0 %vm444_vm6, %v2487_v18  ;;  %vm476_vm6 = vcmp.eq.s32.totalorder %v2809_v8, %v3078_v62 }
 0x11b   :  { %1806 = vmatmul.mubr.msk.f32.gmra.mrb[58].mxu1 %vm506_vm7, %v2487_v18  ;;  %1823 = vmatprep.mubr.msk.f32.mxu0 %vm453_vm8, %v2487_v18  ;;  %vm485_vm7 = vcmp.eq.s32.totalorder %v2833_v16, %v3067_v7  ;;  %vm508_vm8 = vcmp.eq.s32.totalorder %v2891_v42, %v3078_v62 }
 0x11c   :  { %1807 = vmatprep.mubr.msk.f32.mxu1 %vm515_vm9, %v2487_v18  ;;  %vm517_vm9 = vcmp.eq.s32.totalorder %v2911_v49, %v3067_v7 }
 0x11e   :  { %1824 = vmatmul.mubr.msk.f32.gmra.mrb[60].mxu0 %vm452_vm10, %v2487_v18  ;;  %vm484_vm10 = vcmp.eq.s32.totalorder %v2833_v16, %v3078_v62 }
 0x11f   :  { %1808 = vmatmul.mubr.msk.f32.gmra.mrb[60].mxu1 %vm514_vm11, %v2487_v18  ;;  %1825 = vmatprep.mubr.msk.f32.mxu0 %vm461_vm12, %v2487_v18  ;;  %vm493_vm11 = vcmp.eq.s32.totalorder %v2851_v26, %v3067_v7  ;;  %vm516_vm12 = vcmp.eq.s32.totalorder %v2911_v49, %v3078_v62 }
 0x120   :  { %1809 = vmatprep.mubr.msk.f32.mxu1 %vm523_vm13, %v2487_v18  ;;  %vm525_vm13 = vcmp.eq.s32.totalorder %v2931_v59, %v3067_v7 }
 0x122   :  { %1826 = vmatmul.mubr.msk.f32.gmra.mrb[62].mxu0 %vm460_vm14, %v2487_v18  ;;  %vm492_vm14 = vcmp.eq.s32.totalorder %v2851_v26, %v3078_v62 }
 0x123   :  { %1810 = vmatmul.mubr.msk.f32.gmra.mrb[62].mxu1 %vm522_vm15, %v2487_v18  ;;  %1827 = vmatprep.mubr.msk.f32.mxu0 %vm469_vm0, %v2487_v18  ;;  %vm524_vm15 = vcmp.eq.s32.totalorder %v2931_v59, %v3078_v62 }
 0x124   :  { %1835 = vmatprep.mubr.msk.f32.mxu1 %vm501_vm1, %v2487_v18 }
 0x126   :  { %1828 = vmatmul.mubr.msk.f32.gmra.mrb[64].mxu0 %vm468_vm2, %v2487_v18 }
 0x127   :  { %1829 = vmatprep.mubr.msk.f32.mxu0 %vm477_vm3, %v2487_v18  ;;  %1836 = vmatmul.mubr.msk.f32.vlgmr.msra.gmra.mrb[64].mxu1 %vm500_vm4, %v2487_v18 }
 0x128   :  { %1837 = vmatprep.mubr.msk.f32.mxu1 %vm509_vm5, %v2487_v18 }
 0x12a   :  { %1830 = vmatmul.mubr.msk.f32.gmra.mrb[66].mxu0 %vm476_vm6, %v2487_v18 }
 0x12b   :  { %1831 = vmatprep.mubr.msk.f32.mxu0 %vm485_vm7, %v2487_v18  ;;  %1838 = vmatmul.mubr.msk.f32.gmra.mrb[66].mxu1 %vm508_vm8, %v2487_v18 }
 0x12c   :  { %1839 = vmatprep.mubr.msk.f32.mxu1 %vm517_vm9, %v2487_v18 }
 0x12e   :  { %1832 = vmatmul.mubr.msk.f32.gmra.mrb[68].mxu0 %vm484_vm10, %v2487_v18 }
 0x12f   :  { %1833 = vmatprep.mubr.msk.f32.mxu0 %vm493_vm11, %v2487_v18  ;;  %1840 = vmatmul.mubr.msk.f32.gmra.mrb[68].mxu1 %vm516_vm12, %v2487_v18 }
 0x130   :  { %1841 = vmatprep.mubr.msk.f32.mxu1 %vm525_vm13, %v2487_v18 }
 0x132   :  { %1834 = vmatmul.mubr.msk.f32.gmra.mrb[70].mxu0 %vm492_vm14, %v2487_v18 }
 0x133   :  { %1842 = vmatmul.mubr.msk.f32.gmra.mrb[70].mxu1 %vm524_vm15, %v2487_v18 }
 0x16a   :  { %v3230_v3 = vpop.f32.mrb[0].mxu0 }
 0x16b   :  { %v3232_v24 = vpop.f32.mrb[1].mxu0 }
 0x16e   :  { %v1907_v39 = vpop.f32.mrb[0].mxu1 }
 0x16f   :  { %v1908_v50 = vpop.f32.mrb[1].mxu1 }
 0x170   :  { %v1909_v20 = vadd.f32 %v1908_v50, %v1907_v39 }
 0x171   :  { %v3234_v32 = vpop.f32.mrb[2].mxu0 }
 0x172   :  { %v3236_v56 = vpop.f32.mrb[3].mxu0  ;;  %v1910_v58 = vpop.f32.mrb[2].mxu1 }
 0x173   :  { %v1911_v0 = vpop.f32.mrb[3].mxu1 }
 0x174   :  { %v1912_v2 = vadd.f32 %v1911_v0, %v1910_v58 }
 0x176   :  { %v1913_v8 = vpop.f32.mrb[4].mxu1 }
 0x177   :  { %v1914_v9 = vpop.f32.mrb[5].mxu1 }
 0x178   :  { %v1915_v10 = vadd.f32 %v1914_v9, %v1913_v8 }
 0x179   :  { %v3238_v11 = vpop.f32.mrb[4].mxu0 }
 0x17a   :  { %v3240_v18 = vpop.f32.mrb[5].mxu0 }
 0x17d   :  { %v3242_v12 = vpop.f32.mrb[6].mxu0 }
 0x17e   :  { %v3244_v13 = vpop.f32.mrb[7].mxu0  ;;  %v1916_v14 = vpop.f32.mrb[6].mxu1 }
 0x17f   :  { %v1917_v15 = vpop.f32.mrb[7].mxu1 }
 0x180   :  { %v1918_v16 = vadd.f32 %v1917_v15, %v1916_v14 }
 0x182   :  { %v1919_v17 = vpop.f32.mrb[8].mxu1 }
 0x183   :  { %v1920_v19 = vpop.f32.mrb[9].mxu1 }
 0x184   :  { %v1921_v21 = vadd.f32 %v1920_v19, %v1919_v17 }
 0x185   :  { %v3246_v22 = vpop.f32.mrb[8].mxu0 }
 0x186   :  { %v3248_v23 = vpop.f32.mrb[9].mxu0 }
 0x189   :  { %v3250_v25 = vpop.f32.mrb[10].mxu0 }
 0x18a   :  { %v3252_v26 = vpop.f32.mrb[11].mxu0  ;;  %v1922_v27 = vpop.f32.mrb[10].mxu1 }
 0x18b   :  { %v1923_v28 = vpop.f32.mrb[11].mxu1 }
 0x18c   :  { %v1924_v29 = vadd.f32 %v1923_v28, %v1922_v27 }
 0x18e   :  { %v1925_v30 = vpop.f32.mrb[12].mxu1 }
 0x18f   :  { %v1926_v31 = vpop.f32.mrb[13].mxu1 }
 0x190   :  { %v1927_v33 = vadd.f32 %v1926_v31, %v1925_v30 }
 0x191   :  { %v3254_v34 = vpop.f32.mrb[12].mxu0 }
 0x192   :  { %v3256_v35 = vpop.f32.mrb[13].mxu0 }
 0x195   :  { %v3258_v36 = vpop.f32.mrb[14].mxu0 }
 0x196   :  { %v3260_v37 = vpop.f32.mrb[15].mxu0  ;;  %v1928_v38 = vpop.f32.mrb[14].mxu1 }
 0x197   :  { %v1929_v40 = vpop.f32.mrb[15].mxu1 }
 0x198   :  { %v1930_v41 = vadd.f32 %v1929_v40, %v1928_v38 }
 0x199   :  { %v1987_v42 = vpop.f32.mrb[16].mxu0 }
 0x19a   :  { %v1931_v43 = vpop.f32.mrb[16].mxu1  ;;  %v1988_v44 = vpop.f32.mrb[17].mxu0 }
 0x19b   :  { %v1989_v45 = vadd.f32 %v1988_v44, %v1987_v42  ;;  %v1932_v46 = vpop.f32.mrb[17].mxu1 }
 0x19c   :  { %v1933_v47 = vadd.f32 %v1932_v46, %v1931_v43 }
 0x19d   :  { %v1122_v48 = vadd.f32 %v1989_v45, %v1909_v20  ;;  %v1990_v49 = vpop.f32.mrb[18].mxu0 }
 0x19e   :  { %v1934_v51 = vpop.f32.mrb[18].mxu1  ;;  %v1991_v52 = vpop.f32.mrb[19].mxu0 }
 0x19f   :  { %v1992_v53 = vadd.f32 %v1991_v52, %v1990_v49  ;;  %v1935_v54 = vpop.f32.mrb[19].mxu1 }
 0x1a0   :  { %v1936_v55 = vadd.f32 %v1935_v54, %v1934_v51 }
 0x1a1   :  { %v1127_v57 = vadd.f32 %v1992_v53, %v1912_v2  ;;  %v1993_v59 = vpop.f32.mrb[20].mxu0 }
 0x1a2   :  { %v1937_v60 = vpop.f32.mrb[20].mxu1  ;;  %v1994_v61 = vpop.f32.mrb[21].mxu0 }
 0x1a3   :  { %v1995_v63 = vadd.f32 %v1994_v61, %v1993_v59  ;;  %v1938_v4 = vpop.f32.mrb[21].mxu1 }
 0x1a4   :  { %v1939_v5 = vadd.f32 %v1938_v4, %v1937_v60 }
 0x1a5   :  { %v1132_v6 = vadd.f32 %v1995_v63, %v1915_v10  ;;  %v1996_v1 = vpop.f32.mrb[22].mxu0 }
 0x1a6   :  { %v1940_v7 = vpop.f32.mrb[22].mxu1  ;;  %v1997_v62 = vpop.f32.mrb[23].mxu0 }
 0x1a7   :  { %v1998_v39 = vadd.f32 %v1997_v62, %v1996_v1  ;;  %v1941_v50 = vpop.f32.mrb[23].mxu1 }
 0x1a8   :  { %v1942_v20 = vadd.f32 %v1941_v50, %v1940_v7 }
 0x1a9   :  { %v1137_v58 = vadd.f32 %v1998_v39, %v1918_v16  ;;  %v1999_v0 = vpop.f32.mrb[24].mxu0 }
 0x1aa   :  { %v1943_v8 = vpop.f32.mrb[24].mxu1  ;;  %v2000_v9 = vpop.f32.mrb[25].mxu0 }
 0x1ab   :  { %v2001_v14 = vadd.f32 %v2000_v9, %v1999_v0  ;;  %v1944_v15 = vpop.f32.mrb[25].mxu1 }
 0x1ac   :  { %v1945_v2 = vadd.f32 %v1944_v15, %v1943_v8 }
 0x1ad   :  { %v1142_v17 = vadd.f32 %v2001_v14, %v1921_v21  ;;  %v2002_v19 = vpop.f32.mrb[26].mxu0 }
 0x1ae   :  { %v1946_v27 = vpop.f32.mrb[26].mxu1  ;;  %v2003_v28 = vpop.f32.mrb[27].mxu0 }
 0x1af   :  { %v2004_v30 = vadd.f32 %v2003_v28, %v2002_v19  ;;  %v1947_v31 = vpop.f32.mrb[27].mxu1 }
 0x1b0   :  { %v1948_v10 = vadd.f32 %v1947_v31, %v1946_v27 }
 0x1b1   :  { %v3262_v38 = vadd.f32 %v2004_v30, %v1924_v29  ;;  %v2005_v40 = vpop.f32.mrb[28].mxu0 }
 0x1b2   :  { %v1949_v42 = vpop.f32.mrb[28].mxu1  ;;  %v2006_v43 = vpop.f32.mrb[29].mxu0 }
 0x1b3   :  { %v2007_v44 = vadd.f32 %v2006_v43, %v2005_v40  ;;  %v1950_v16 = vpop.f32.mrb[29].mxu1 }
 0x1b4   :  { %v3264_v45 = vadd.f32 %v1950_v16, %v1949_v42 }
 0x1b5   :  { %v3266_v46 = vadd.f32 %v2007_v44, %v1927_v33  ;;  %v2008_v49 = vpop.f32.mrb[30].mxu0 }
 0x1b6   :  { %v1952_v51 = vpop.f32.mrb[30].mxu1  ;;  %v2009_v21 = vpop.f32.mrb[31].mxu0 }
 0x1b7   :  { %v2010_v52 = vadd.f32 %v2009_v21, %v2008_v49  ;;  %v1953_v53 = vpop.f32.mrb[31].mxu1 }
 0x1b8   :  { %v3268_v54 = vadd.f32 %v1953_v53, %v1952_v51 }
 0x1b9   :  { %v3270_v59 = vadd.f32 %v2010_v52, %v1930_v41  ;;  %v2011_v29 = vpop.f32.mrb[32].mxu0 }
 0x1ba   :  { %v2012_v60 = vpop.f32.mrb[33].mxu0  ;;  %v2067_v61 = vpop.f32.mrb[32].mxu1 }
 0x1bb   :  { %v2013_v63 = vadd.f32 %v2012_v60, %v2011_v29  ;;  %v2068_v4 = vpop.f32.mrb[33].mxu1 }
 0x1bc   :  { %v2069_v1 = vadd.f32 %v2068_v4, %v2067_v61 }
 0x1bd   :  { %v3272_v7 = vadd.f32 %v2013_v63, %v1933_v47  ;;  %v2014_v62 = vpop.f32.mrb[34].mxu0 }
 0x1be   :  { %v3274_v33 = vadd.f32 %v2069_v1, %v1122_v48  ;;  %v2015_v39 = vpop.f32.mrb[35].mxu0  ;;  %v2070_v50 = vpop.f32.mrb[34].mxu1 }
 0x1bf   :  { %v2016_v0 = vadd.f32 %v2015_v39, %v2014_v62  ;;  %v2071_v8 = vpop.f32.mrb[35].mxu1 }
 0x1c0   :  { %v2072_v9 = vadd.f32 %v2071_v8, %v2070_v50 }
 0x1c1   :  { %v3276_v14 = vadd.f32 %v2016_v0, %v1936_v55  ;;  %v2017_v41 = vpop.f32.mrb[36].mxu0 }
 0x1c2   :  { %v3278_v15 = vadd.f32 %v2072_v9, %v1127_v57  ;;  %v2018_v19 = vpop.f32.mrb[37].mxu0  ;;  %v2073_v27 = vpop.f32.mrb[36].mxu1 }
 0x1c3   :  { %v2019_v28 = vadd.f32 %v2018_v19, %v2017_v41  ;;  %v2074_v30 = vpop.f32.mrb[37].mxu1 }
 0x1c4   :  { %v2075_v31 = vadd.f32 %v2074_v30, %v2073_v27 }
 0x1c5   :  { %v3280_v47 = vadd.f32 %v2019_v28, %v1939_v5  ;;  %v2020_v40 = vpop.f32.mrb[38].mxu0 }
 0x1c6   :  { %v3282_v48 = vadd.f32 %v2075_v31, %v1132_v6  ;;  %v2021_v42 = vpop.f32.mrb[39].mxu0  ;;  %v2076_v43 = vpop.f32.mrb[38].mxu1 }
 0x1c7   :  { %v2022_v44 = vadd.f32 %v2021_v42, %v2020_v40  ;;  %v2077_v16 = vpop.f32.mrb[39].mxu1 }
 0x1c8   :  { %v2078_v49 = vadd.f32 %v2077_v16, %v2076_v43 }
 0x1c9   :  { %v3284_v55 = vadd.f32 %v2022_v44, %v1942_v20  ;;  %v2023_v51 = vpop.f32.mrb[40].mxu0 }
 0x1ca   :  { %v3286_v57 = vadd.f32 %v2078_v49, %v1137_v58  ;;  %v2024_v21 = vpop.f32.mrb[41].mxu0  ;;  %v2079_v52 = vpop.f32.mrb[40].mxu1 }
 0x1cb   :  { %v2025_v53 = vadd.f32 %v2024_v21, %v2023_v51  ;;  %v2080_v29 = vpop.f32.mrb[41].mxu1 }
 0x1cc   :  { %v2081_v60 = vadd.f32 %v2080_v29, %v2079_v52 }
 0x1cd   :  { %v3288_v5 = vadd.f32 %v2025_v53, %v1945_v2  ;;  %v2026_v61 = vpop.f32.mrb[42].mxu0 }
 0x1ce   :  { %v3290_v6 = vadd.f32 %v2081_v60, %v1142_v17  ;;  %v2027_v63 = vpop.f32.mrb[43].mxu0  ;;  %v2082_v4 = vpop.f32.mrb[42].mxu1 }
 0x1cf   :  { %v2028_v1 = vadd.f32 %v2027_v63, %v2026_v61  ;;  %v2083_v62 = vpop.f32.mrb[43].mxu1 }
 0x1d0   :  { %v2084_v39 = vadd.f32 %v2083_v62, %v2082_v4  ;;  %v1491_v4 = vmul.f32 11.313708, %v3230_v3 }
 0x1d1   :  { %v3292_v20 = vadd.f32 %v2028_v1, %v1948_v10  ;;  %v2029_v50 = vpop.f32.mrb[44].mxu0 }
 0x1d2   :  { %v3295_v58 = vadd.f32 %v2084_v39, %v3262_v38  ;;  %v2030_v0 = vpop.f32.mrb[45].mxu0  ;;  %v2085_v8 = vpop.f32.mrb[44].mxu1 }
 0x1d3   :  { %v2031_v9 = vadd.f32 %v2030_v0, %v2029_v50  ;;  %v2086_v41 = vpop.f32.mrb[45].mxu1 }
 0x1d4   :  { %v2087_v2 = vadd.f32 %v2086_v41, %v2085_v8 }
 0x1d5   :  { %v3298_v19 = vadd.f32 %v2031_v9, %v3264_v45  ;;  %v2032_v17 = vpop.f32.mrb[46].mxu0  ;;  %v1492_v9 = vmul.f32 11.313708, %v3236_v56 }
 0x1d6   :  { %v3301_v27 = vadd.f32 %v2087_v2, %v3266_v46  ;;  %v2033_v28 = vpop.f32.mrb[47].mxu0  ;;  %v2088_v30 = vpop.f32.mrb[46].mxu1  ;;  %v1490_v46 = vmul.f32 11.313708, %v3232_v24 }
 0x1d7   :  { %v2034_v10 = vadd.f32 %v2033_v28, %v2032_v17  ;;  %v2089_v31 = vpop.f32.mrb[47].mxu1 }
 0x1d8   :  { %v2090_v40 = vadd.f32 %v2089_v31, %v2088_v30  ;;  %v1493_v31 = vmul.f32 11.313708, %v3234_v32 }
 0x1d9   :  { %v3304_v38 = vadd.f32 %v2034_v10, %v3268_v54  ;;  %v2147_v42 = vpop.f32.mrb[48].mxu0 }
 0x1da   :  { %v3307_v43 = vadd.f32 %v2090_v40, %v3270_v59  ;;  %v2091_v44 = vpop.f32.mrb[48].mxu1  ;;  %v2148_v16 = vpop.f32.mrb[49].mxu0 }
 0x1db   :  { %v2149_v45 = vadd.f32 %v2148_v16, %v2147_v42  ;;  %v2092_v49 = vpop.f32.mrb[49].mxu1 }
 0x1dc   :  { %v2093_v51 = vadd.f32 %v2092_v49, %v2091_v44 }
 0x1dd   :  { %v1412_v21 = vadd.f32 %v2149_v45, %v3274_v33  ;;  %v2150_v52 = vpop.f32.mrb[50].mxu0 }
 0x1de   :  { %v3312_v53 = vadd.f32 %v2093_v51, %v3272_v7  ;;  %v2094_v29 = vpop.f32.mrb[50].mxu1  ;;  %v2151_v54 = vpop.f32.mrb[51].mxu0  ;;  %v1494_v51 = vmul.f32 11.313708, %v3240_v18 }
 0x1df   :  { %v1506_v60 = vadd.f32 %v1490_v46, %v1412_v21  ;;  %v2152_v61 = vadd.f32 %v2151_v54, %v2150_v52  ;;  %v2095_v63 = vpop.f32.mrb[51].mxu1 }
 0x1e0   :  { %v2096_v59 = vadd.f32 %v2095_v63, %v2094_v29 }
 0x1e1   :  { %1522 = vst [vmem:[#allocation7] sm:$0xff] %v1506_v60  ;;  %v1417_v1 = vadd.f32 %v2152_v61, %v3278_v15  ;;  %v2153_v62 = vpop.f32.mrb[52].mxu0  ;;  %v1495_v61 = vmul.f32 11.313708, %v3238_v11 }
 0x1e2   :  { %v3317_v24 = vadd.f32 %v2096_v59, %v3276_v14  ;;  %v2097_v33 = vpop.f32.mrb[52].mxu1  ;;  %v2154_v39 = vpop.f32.mrb[53].mxu0 }
 0x1e3   :  { %v1507_v50 = vadd.f32 %v1491_v4, %v1417_v1  ;;  %v2155_v7 = vadd.f32 %v2154_v39, %v2153_v62  ;;  %v2098_v0 = vpop.f32.mrb[53].mxu1  ;;  %v1496_v39 = vmul.f32 11.313708, %v3244_v13 }
 0x1e4   :  { %v2099_v8 = vadd.f32 %v2098_v0, %v2097_v33 }
 0x1e5   :  { %1523 = vst [vmem:[#allocation7 + $0x8] sm:$0xff] %v1507_v50  ;;  %v1422_v41 = vadd.f32 %v2155_v7, %v3282_v48  ;;  %v2156_v2 = vpop.f32.mrb[54].mxu0 }
 0x1e6   :  { %v3322_v3 = vadd.f32 %v2099_v8, %v3280_v47  ;;  %v2100_v15 = vpop.f32.mrb[54].mxu1  ;;  %v2157_v17 = vpop.f32.mrb[55].mxu0 }
 0x1e7   :  { %v1508_v28 = vadd.f32 %v1492_v9, %v1422_v41  ;;  %v2158_v14 = vadd.f32 %v2157_v17, %v2156_v2  ;;  %v2101_v30 = vpop.f32.mrb[55].mxu1  ;;  %v1497_v2 = vmul.f32 11.313708, %v3242_v12  ;;  %v1502_v12 = vmul.f32 11.313708, %v3256_v35 }
 0x1e8   :  { %v2102_v10 = vadd.f32 %v2101_v30, %v2100_v15 }
 0x1e9   :  { %1524 = vst [vmem:[#allocation7 + $0x10] sm:$0xff] %v1508_v28  ;;  %v1427_v40 = vadd.f32 %v2158_v14, %v3286_v57  ;;  %v2159_v42 = vpop.f32.mrb[56].mxu0 }
 0x1ea   :  { %v3327_v56 = vadd.f32 %v2102_v10, %v3284_v55  ;;  %v2103_v48 = vpop.f32.mrb[56].mxu1  ;;  %v2160_v44 = vpop.f32.mrb[57].mxu0 }
 0x1eb   :  { %v1509_v16 = vadd.f32 %v1493_v31, %v1427_v40  ;;  %v2161_v47 = vadd.f32 %v2160_v44, %v2159_v42  ;;  %v2104_v45 = vpop.f32.mrb[57].mxu1  ;;  %v1498_v31 = vmul.f32 11.313708, %v3248_v23 }
 0x1ec   :  { %v2105_v49 = vadd.f32 %v2104_v45, %v2103_v48 }
 0x1ed   :  { %1525 = vst [vmem:[#allocation7 + $0x18] sm:$0xff] %v1509_v16  ;;  %v1432_v46 = vadd.f32 %v2161_v47, %v3290_v6  ;;  %v2162_v21 = vpop.f32.mrb[58].mxu0 }
 0x1ee   :  { %v1327_v32 = vadd.f32 %v2105_v49, %v3288_v5  ;;  %v2106_v52 = vpop.f32.mrb[58].mxu1  ;;  %v2163_v57 = vpop.f32.mrb[59].mxu0 }
 0x1ef   :  { %v1510_v29 = vadd.f32 %v1494_v51, %v1432_v46  ;;  %v2164_v54 = vadd.f32 %v2163_v57, %v2162_v21  ;;  %v2107_v55 = vpop.f32.mrb[59].mxu1  ;;  %v1499_v51 = vmul.f32 11.313708, %v3246_v22  ;;  %v1503_v21 = vmul.f32 11.313708, %v3254_v34 }
 0x1f0   :  { %v2108_v60 = vadd.f32 %v2107_v55, %v2106_v52 }
 0x1f1   :  { %1526 = vst [vmem:[#allocation7 + $0x20] sm:$0xff] %v1510_v29  ;;  %v1437_v63 = vadd.f32 %v2164_v54, %v3295_v58  ;;  %v2165_v59 = vpop.f32.mrb[60].mxu0 }
 0x1f2   :  { %v1332_v18 = vadd.f32 %v2108_v60, %v3292_v20  ;;  %v2109_v4 = vpop.f32.mrb[60].mxu1  ;;  %v2166_v1 = vpop.f32.mrb[61].mxu0  ;;  %v1500_v60 = vmul.f32 11.313708, %v3252_v26 }
 0x1f3   :  { %v1511_v6 = vadd.f32 %v1495_v61, %v1437_v63  ;;  %v2167_v62 = vadd.f32 %v2166_v1, %v2165_v59  ;;  %v2110_v33 = vpop.f32.mrb[61].mxu1 }
 0x1f4   :  { %v2111_v5 = vadd.f32 %v2110_v33, %v2109_v4  ;;  %v1501_v33 = vmul.f32 11.313708, %v3250_v25 }
 0x1f5   :  { %1527 = vst [vmem:[#allocation7 + $0x28] sm:$0xff] %v1511_v6  ;;  %v1442_v50 = vadd.f32 %v2167_v62, %v3301_v27  ;;  %v2168_v7 = vpop.f32.mrb[62].mxu0 }
 0x1f6   :  { %v1337_v11 = vadd.f32 %v2111_v5, %v3298_v19  ;;  %v2112_v0 = vpop.f32.mrb[62].mxu1  ;;  %v2169_v8 = vpop.f32.mrb[63].mxu0 }
 0x1f7   :  { %v1512_v58 = vadd.f32 %v1496_v39, %v1442_v50  ;;  %v2170_v9 = vadd.f32 %v2169_v8, %v2168_v7  ;;  %v2113_v41 = vpop.f32.mrb[63].mxu1 }
 0x1f8   :  { %v2114_v20 = vadd.f32 %v2113_v41, %v2112_v0 }
 0x1f9   :  { %1528 = vst [vmem:[#allocation7 + $0x30] sm:$0xff] %v1512_v58  ;;  %v1447_v15 = vadd.f32 %v2170_v9, %v3307_v43  ;;  %v2171_v17 = vpop.f32.mrb[64].mxu0 }
 0x1fa   :  { %v1342_v13 = vadd.f32 %v2114_v20, %v3304_v38  ;;  %v2172_v28 = vpop.f32.mrb[65].mxu0  ;;  %v2183_v14 = vpop.f32.mrb[64].mxu1 }
 0x1fb   :  { %v1513_v27 = vadd.f32 %v1497_v2, %v1447_v15  ;;  %v2173_v30 = vadd.f32 %v2172_v28, %v2171_v17  ;;  %v2184_v10 = vpop.f32.mrb[65].mxu1 }
 0x1fc   :  { %v2185_v19 = vadd.f32 %v2184_v10, %v2183_v14 }
 0x1fd   :  { %1529 = vst [vmem:[#allocation7 + $0x38] sm:$0xff] %v1513_v27  ;;  %v1452_v40 = vadd.f32 %v2173_v30, %v3312_v53  ;;  %v2174_v42 = vpop.f32.mrb[66].mxu0 }
 0x1fe   :  { %v1472_v48 = vadd.f32 %v2185_v19, %v1327_v32  ;;  %v2175_v44 = vpop.f32.mrb[67].mxu0  ;;  %v2186_v43 = vpop.f32.mrb[66].mxu1 }
 0x1ff   :  { %v1514_v16 = vadd.f32 %v1498_v31, %v1452_v40  ;;  %v2176_v47 = vadd.f32 %v2175_v44, %v2174_v42  ;;  %v2187_v38 = vpop.f32.mrb[67].mxu1 }
 0x200   :  { %v1518_v45 = vadd.f32 %v1502_v12, %v1472_v48  ;;  %v2188_v49 = vadd.f32 %v2187_v38, %v2186_v43 }
 0x201   :  { %1530 = vst [vmem:[#allocation7 + $0x40] sm:$0xff] %v1514_v16  ;;  %v1457_v46 = vadd.f32 %v2176_v47, %v3317_v24  ;;  %v2177_v23 = vpop.f32.mrb[68].mxu0  ;;  %v1504_v24 = vmul.f32 11.313708, %v3260_v37 }
 0x202   :  { %1534 = vst [vmem:[#allocation7 + $0x60] sm:$0xff] %v1518_v45  ;;  %v1477_v53 = vadd.f32 %v2188_v49, %v1332_v18  ;;  %v2178_v52 = vpop.f32.mrb[69].mxu0  ;;  %v2189_v35 = vpop.f32.mrb[68].mxu1 }
 0x203   :  { %v1515_v32 = vadd.f32 %v1499_v51, %v1457_v46  ;;  %v2179_v57 = vadd.f32 %v2178_v52, %v2177_v23  ;;  %v2190_v29 = vpop.f32.mrb[69].mxu1 }
 0x204   :  { %v1519_v54 = vadd.f32 %v1503_v21, %v1477_v53  ;;  %v2191_v55 = vadd.f32 %v2190_v29, %v2189_v35 }
 0x205   :  { %1531 = vst [vmem:[#allocation7 + $0x48] sm:$0xff] %v1515_v32  ;;  %v1462_v22 = vadd.f32 %v2179_v57, %v3322_v3  ;;  %v2180_v61 = vpop.f32.mrb[70].mxu0  ;;  %v1505_v3 = vmul.f32 11.313708, %v3258_v36 }
 0x206   :  { %1535 = vst [vmem:[#allocation7 + $0x68] sm:$0xff] %v1519_v54  ;;  %v1482_v63 = vadd.f32 %v2191_v55, %v1337_v11  ;;  %v2181_v34 = vpop.f32.mrb[71].mxu0  ;;  %v2192_v59 = vpop.f32.mrb[70].mxu1 }
 0x207   :  { %v1516_v18 = vadd.f32 %v1500_v60, %v1462_v22  ;;  %v2182_v4 = vadd.f32 %v2181_v34, %v2180_v61  ;;  %v2193_v1 = vpop.f32.mrb[71].mxu1 }
 0x208   :  { %v1520_v6 = vadd.f32 %v1504_v24, %v1482_v63  ;;  %v2194_v62 = vadd.f32 %v2193_v1, %v2192_v59 }
 0x209   :  { %1532 = vst [vmem:[#allocation7 + $0x50] sm:$0xff] %v1516_v18  ;;  %v1467_v26 = vadd.f32 %v2182_v4, %v3327_v56 }
 0x20a   :  { %1536 = vst [vmem:[#allocation7 + $0x70] sm:$0xff] %v1520_v6  ;;  %v1487_v37 = vadd.f32 %v2194_v62, %v1342_v13 }
 0x20b   :  { %v1517_v5 = vadd.f32 %v1501_v33, %v1467_v26 }
 0x20c   :  { %v1521_v39 = vadd.f32 %v1505_v3, %v1487_v37 }
 0x20d   :  { %1533 = vst [vmem:[#allocation7 + $0x58] sm:$0xff] %v1517_v5 }
 0x20e   :  { %1537 = vst [vmem:[#allocation7 + $0x78] sm:$0xff] %v1521_v39 }
 0x20f   :  { %2468 = shalt.err (!%p2465_p12)
}
 0x210   :  { %s2469_s6 = scalar_lea.hbm %s3373_s5, 2048 }
 0x211   :  { %p2470_p13 = scmp.ne.s32.totalorder %s3373_s5, %s2469_s6  ;;  %p2473_p0 = scmp.lt.u32.totalorder %s2469_s6, %s3373_s5 }
 0x213   :  { %p2475_p1 = pnand %p2473_p0, %p2470_p13 }
 0x215   :  { %2478 = shalt.err (!%p2475_p1)
}
 0x216   :  { %1549 = dma.vmem_to_hbm [thread:$0]  %s1544_s26, 2048, %s3373_s5, [#allocation6], %s2484_s28, %s2484_s28, %s2485_s29  }
 0x217   :  { %2481 = dma.done.wait [#allocation6], 2048  }
 0x218   :  { %2482 = vsyncadd [#allocation6], 4294965248 }
 0x219   :  { %1553 = vsyncpa [#allocation5], 1 }
 0x21a   :  { %1554 = vsyncpa [#allocation6], 1 }

</bundles_post_ra>
